<compile_context>
chip_gen: v7x
topology: tpu7x:2x2x1
jax: 0.10.0
libtpu: 0.0.40
codegen_flags: <defaults>
</compile_context>

<pallas_src>
import functools

import jax
import jax.numpy as jnp
from jax.experimental import pallas as pl
from jax.experimental.pallas import tpu as pltpu

F32 = jnp.float32
COMPUTE_DTYPE = jnp.bfloat16      # MXU input dtype; accumulation is always f32.


# --------------------------------------------------------------------------
# Constant-operand builders (plain JAX, tiny, traced once per shape).
# --------------------------------------------------------------------------
def _bilinear_matrix_align_corners(in_size, out_size):
    """(out, in) row-stochastic matrix == nn.Upsample(bilinear, align_corners=True)."""
    if out_size == 1:
        src = jnp.zeros((1,), F32)
    else:
        src = jnp.arange(out_size, dtype=F32) * ((in_size - 1) / (out_size - 1))
    i0 = jnp.clip(jnp.floor(src).astype(jnp.int32), 0, in_size - 1)
    i1 = jnp.minimum(i0 + 1, in_size - 1)
    w1 = src - i0.astype(F32)
    w0 = 1.0 - w1
    rows = jnp.arange(out_size)
    r = jnp.zeros((out_size, in_size), F32)
    r = r.at[rows, i0].add(w0)
    r = r.at[rows, i1].add(w1)
    return r


def _conv_w_to_lane_matmul(w_hwio, w_out, pad_w):
    """Per-kh block-Toeplitz matrices for a channels-in-lanes conv.

    A KHxKW 'same' conv over a (H, W*Cin) slab becomes
        Y = sum_kh  X_rows[kh:kh+H, :] @ B[kh]
    Returns (KH, (w_out+2*pad_w)*Cin, w_out*Cout); callers slice the row range
    their (unpadded) data occupies, folding the W zero padding (and any F.pad
    W offset) into the weights.
    """
    kh_n, kw_n, cin, cout = w_hwio.shape
    wpad = w_out + 2 * pad_w
    eye_w = jnp.eye(w_out, dtype=F32)
    mats = []
    for kh in range(kh_n):
        b = jnp.zeros((wpad * cin, w_out * cout), F32)
        for kw in range(kw_n):
            blk = jnp.kron(eye_w, w_hwio[kh, kw].astype(F32))   # (w_out*cin, w_out*cout)
            b = b + jnp.pad(blk, ((kw * cin, (wpad - w_out - kw) * cin), (0, 0)))
        mats.append(b)
    return jnp.stack(mats, axis=0)


def _tile_lanes(per_channel, width):
    """(C,) per-channel vector -> (1, width*C) lane-tiled row (index w*C+c -> v[c])."""
    return jnp.tile(per_channel, (width,)).reshape(1, width * per_channel.shape[0])


def _bn_scale_shift(stats, gamma, beta, count, eps=1e-5):
    """Finalize training-mode BatchNorm from stacked per-step (sum, sum_sq) rows."""
    s = jnp.sum(stats, axis=0)                                 # (2, C)
    mean = s[0] / count
    var = jnp.maximum(s[1] / count - mean * mean, 0.0)         # biased, as BN training
    scale = gamma * jax.lax.rsqrt(var + eps)
    shift = beta - mean * scale
    return scale, shift


# --------------------------------------------------------------------------
# Kernels.
# --------------------------------------------------------------------------
def _stage1_kernel(x2_ref, x1_ref, rh_ref, sw_ref, bcat_ref, pool_ref,
                   y_ref, stats_ref, xcat_ref, *, pad_h, row_off_x1, frame_rows):
    """Per grid step (bt images): bilinear upsample(x1) + fused concat-conv1
    + stacked BN1 partial stats.

    x2_ref:(bt,H2,W2*C2)  x1_ref:(bt,H1,W1*C1)  rh_ref:(Hup,H1)
    sw_ref:(W1*C1,Wup*C1) bcat_ref:(KH, W2*C2+Wup*C1, W2*Cm)  pool:(W2*Cm,Cm)
    y_ref:(bt,H2,W2*Cm)   stats_ref:(1,2,Cm)
    xcat_ref:(bt*frame_rows, W2*C2+Wup*C1)   staging slab, f32
    """
    bt, h2, n_mid = y_ref.shape
    hup = rh_ref.shape[0]
    kd = bcat_ref.shape[0]
    k2 = x2_ref.shape[2]
    kcat = xcat_ref.shape[1]
    hs = frame_rows
    m_full = bt * hs - 2 * pad_h
    cdt = bcat_ref.dtype                      # MXU compute dtype (bf16)

    # ---- staging: [x2 | upsample(x1)] frames; only the row halos are zeroed.
    for b in range(bt):
        base = b * hs
        if pad_h > 0:
            xcat_ref[base:base + pad_h, :] = jnp.zeros((pad_h, kcat), F32)
        if hs > pad_h + h2:
            xcat_ref[base + pad_h + h2:base + hs, :] = (
                jnp.zeros((hs - pad_h - h2, kcat), F32))
        # skip slab (x2) goes straight into the left lanes (no padded copy).
        xcat_ref[base + pad_h:base + pad_h + h2, :k2] = x2_ref[b]
        # bilinear x2 upsample (align_corners=True) == two lane-dense matmuls.
        t = jnp.dot(rh_ref[...], x1_ref[b].astype(cdt),
                    preferred_element_type=jnp.float32)
        x1up = jnp.dot(t.astype(cdt), sw_ref[...],
                       preferred_element_type=jnp.float32)
        xcat_ref[base + row_off_x1:base + row_off_x1 + hup, k2:] = x1up
        # F.pad rows not covered by the upsample (diffY > 0) -> zero x1 lanes.
        if row_off_x1 > pad_h:
            xcat_ref[base + pad_h:base + row_off_x1, k2:] = (
                jnp.zeros((row_off_x1 - pad_h, kcat - k2), F32))
        if pad_h + h2 > row_off_x1 + hup:
            xcat_ref[base + row_off_x1 + hup:base + pad_h + h2, k2:] = (
                jnp.zeros((pad_h + h2 - row_off_x1 - hup, kcat - k2), F32))

    # ---- conv1: kd shifted lane-dense matmuls over the batch-flattened rows.
    #      cat([x2, x1]) is fused into a single K = W2*C2 + Wup*C1 per tap.
    acc = jnp.zeros((m_full, n_mid), jnp.float32)
    for kh in range(kd):
        acc = acc + jnp.dot(xcat_ref[kh:kh + m_full, :].astype(cdt),
                            bcat_ref[kh], preferred_element_type=jnp.float32)

    # ---- write outputs + stacked BN1 partials (one dot for sum & sum^2) ----
    ssum = jnp.zeros((1, n_mid), jnp.float32)
    ssq = jnp.zeros((1, n_mid), jnp.float32)
    for b in range(bt):
        yb = acc[b * hs:b * hs + h2, :]
        y_ref[b] = yb.astype(y_ref.dtype)
        ssum = ssum + jnp.sum(yb, axis=0, keepdims=True)
        ssq = ssq + jnp.sum(yb * yb, axis=0, keepdims=True)
    stats_ref[0] = jnp.dot(jnp.concatenate([ssum, ssq], axis=0), pool_ref[...],
                           preferred_element_type=jnp.float32)


def _stage2_kernel(y1_ref, scale_ref, shift_ref, bw_ref, pool_ref,
                   y_ref, stats_ref, a_ref, *, pad_h, frame_rows):
    """Per grid step (bt images): BN1-apply + ReLU1 fused into conv2's
    prologue + stacked BN2 partial stats."""
    bt, h2, n_out = y_ref.shape
    kd = bw_ref.shape[0]
    lanes = a_ref.shape[1]
    hs = frame_rows
    m_full = bt * hs - 2 * pad_h
    cdt = bw_ref.dtype

    for b in range(bt):
        base = b * hs
        if pad_h > 0:
            a_ref[base:base + pad_h, :] = jnp.zeros((pad_h, lanes), F32)
        if hs > pad_h + h2:
            a_ref[base + pad_h + h2:base + hs, :] = (
                jnp.zeros((hs - pad_h - h2, lanes), F32))
        # BN1 apply + ReLU1 (f32 VPU work, per v5e guidance).
        a_ref[base + pad_h:base + pad_h + h2, :] = jnp.maximum(
            y1_ref[b] * scale_ref[...] + shift_ref[...], 0.0)

    acc = jnp.zeros((m_full, n_out), jnp.float32)
    for kh in range(kd):
        acc = acc + jnp.dot(a_ref[kh:kh + m_full, :].astype(cdt),
                            bw_ref[kh], preferred_element_type=jnp.float32)

    ssum = jnp.zeros((1, n_out), jnp.float32)
    ssq = jnp.zeros((1, n_out), jnp.float32)
    for b in range(bt):
        yb = acc[b * hs:b * hs + h2, :]
        y_ref[b] = yb.astype(y_ref.dtype)
        ssum = ssum + jnp.sum(yb, axis=0, keepdims=True)
        ssq = ssq + jnp.sum(yb * yb, axis=0, keepdims=True)
    stats_ref[0] = jnp.dot(jnp.concatenate([ssum, ssq], axis=0), pool_ref[...],
                           preferred_element_type=jnp.float32)


# --------------------------------------------------------------------------
# Forward wrapper.
# --------------------------------------------------------------------------
def up_forward(params, x1_nchw, x2_nchw, *, max_images_per_step=8):
    """Up(bilinear=True): upsample(x1)x2 -> F.pad to x2's size -> cat([x2, x1])
    -> DoubleConv(conv-BN-ReLU x2), training-mode BatchNorm. I/O is NCHW."""
    n, c1, h1, w1 = x1_nchw.shape
    n2, c2, h2, w2 = x2_nchw.shape
    assert n == n2
    wc1 = params["conv1_w"]                       # (kd, kd, c2+c1, cmid) HWIO
    wc2 = params["conv2_w"]                       # (kd, kd, cmid, cout) HWIO
    kd = wc1.shape[0]
    assert kd % 2 == 1, "same-size conv needs odd kernel (in_channels//2 must be odd)"
    assert wc1.shape[2] == c1 + c2
    pad_hw = (kd - 1) // 2
    cmid, cout = wc1.shape[3], wc2.shape[3]

    hup, wup = 2 * h1, 2 * w1                     # nn.Upsample(scale_factor=2)
    diff_y, diff_x = h2 - hup, w2 - wup
    assert diff_y >= 0 and diff_x >= 0, "negative F.pad (crop) not supported"
    oy, ox = diff_y // 2, diff_x // 2

    # Images per grid step (largest divisor of n <= cap): packs the matmul M
    # dimension instead of relying on tiny per-image grid steps.
    bt = 1
    for d in range(min(n, max_images_per_step), 0, -1):
        if n % d == 0:
            bt = d
            break
    steps = n // bt
    # Per-image frame height in the staging slab (halo'd conv frame), rounded
    # up to a sublane multiple so per-image bases are 8-row aligned.
    frame = -(-(h2 + 2 * pad_hw) // 8) * 8

    # Boundary-only layout change: NCHW -> (N, H, W*C) channels-in-lanes slabs.
    x1f = jnp.transpose(x1_nchw, (0, 2, 3, 1)).reshape(n, h1, w1 * c1).astype(F32)
    x2f = jnp.transpose(x2_nchw, (0, 2, 3, 1)).reshape(n, h2, w2 * c2).astype(F32)

    # Constant operands (bf16 for the MXU; stats pools stay f32).
    rh = _bilinear_matrix_align_corners(h1, hup).astype(COMPUTE_DTYPE)
    rw = _bilinear_matrix_align_corners(w1, wup)
    sw = jnp.kron(rw.T, jnp.eye(c1, dtype=F32)).astype(COMPUTE_DTYPE)

    # conv1 split along input channels: [:c2] pairs with x2, [c2:] with the
    # upsampled x1 (torch.cat order).  The 'same' W padding and F.pad's W
    # offset are folded into the row slices, then both halves are stacked
    # along K so each kh tap of the fused concat-conv is a single matmul.
    bx2 = _conv_w_to_lane_matmul(wc1[:, :, :c2, :], w2, pad_hw)[
        :, pad_hw * c2:(pad_hw + w2) * c2, :]
    bx1 = _conv_w_to_lane_matmul(wc1[:, :, c2:, :], w2, pad_hw)[
        :, (pad_hw + ox) * c1:(pad_hw + ox + wup) * c1, :]
    bcat = jnp.concatenate([bx2, bx1], axis=1).astype(COMPUTE_DTYPE)
    bconv2 = _conv_w_to_lane_matmul(wc2, w2, pad_hw)[
        :, pad_hw * cmid:(pad_hw + w2) * cmid, :].astype(COMPUTE_DTYPE)

    pool1 = jnp.kron(jnp.ones((w2, 1), F32), jnp.eye(cmid, dtype=F32))
    pool2 = jnp.kron(jnp.ones((w2, 1), F32), jnp.eye(cout, dtype=F32))

    kcat = w2 * c2 + wup * c1

    # 64 MiB scoped VMEM: bigger blocks / better DMA amortization on v5e/v6e
    # (128 MiB physical) while still within v7x's 64 MiB per-core VMEM.
    mosaic = pltpu.CompilerParams(dimension_semantics=("parallel",),
                                  vmem_limit_bytes=64 * 1024 * 1024)

    # ---- stage 1: upsample + fused concat-conv1 + BN1 partial stats --------
    y1, stats1 = pl.pallas_call(
        functools.partial(_stage1_kernel, pad_h=pad_hw,
                          row_off_x1=pad_hw + oy, frame_rows=frame),
        out_shape=(jax.ShapeDtypeStruct((n, h2, w2 * cmid), F32),
                   jax.ShapeDtypeStruct((steps, 2, cmid), F32)),
        grid=(steps,),
        in_specs=[
            pl.BlockSpec((bt, h2, w2 * c2), lambda i: (i, 0, 0)),
            pl.BlockSpec((bt, h1, w1 * c1), lambda i: (i, 0, 0)),
            pl.BlockSpec((hup, h1), lambda i: (0, 0)),
            pl.BlockSpec((w1 * c1, wup * c1), lambda i: (0, 0)),
            pl.BlockSpec((kd, kcat, w2 * cmid), lambda i: (0, 0, 0)),
            pl.BlockSpec((w2 * cmid, cmid), lambda i: (0, 0)),
        ],
        out_specs=(pl.BlockSpec((bt, h2, w2 * cmid), lambda i: (i, 0, 0)),
                   pl.BlockSpec((1, 2, cmid), lambda i: (i, 0, 0))),
        scratch_shapes=[pltpu.VMEM((bt * frame, kcat), F32)],
        compiler_params=mosaic,
    )(x2f, x1f, rh, sw, bcat, pool1)

    scale1, shift1 = _bn_scale_shift(stats1, params["bn1_gamma"],
                                     params["bn1_beta"], count=n * h2 * w2)

    # ---- stage 2: BN1-apply + ReLU fused into conv2 + BN2 partial stats ----
    y2, stats2 = pl.pallas_call(
        functools.partial(_stage2_kernel, pad_h=pad_hw, frame_rows=frame),
        out_shape=(jax.ShapeDtypeStruct((n, h2, w2 * cout), F32),
                   jax.ShapeDtypeStruct((steps, 2, cout), F32)),
        grid=(steps,),
        in_specs=[
            pl.BlockSpec((bt, h2, w2 * cmid), lambda i: (i, 0, 0)),
            pl.BlockSpec((1, w2 * cmid), lambda i: (0, 0)),
            pl.BlockSpec((1, w2 * cmid), lambda i: (0, 0)),
            pl.BlockSpec((kd, w2 * cmid, w2 * cout), lambda i: (0, 0, 0)),
            pl.BlockSpec((w2 * cout, cout), lambda i: (0, 0)),
        ],
        out_specs=(pl.BlockSpec((bt, h2, w2 * cout), lambda i: (i, 0, 0)),
                   pl.BlockSpec((1, 2, cout), lambda i: (i, 0, 0))),
        scratch_shapes=[pltpu.VMEM((bt * frame, w2 * cmid), F32)],
        compiler_params=mosaic,
    )(y1, _tile_lanes(scale1, w2), _tile_lanes(shift1, w2), bconv2, pool2)

    scale2, shift2 = _bn_scale_shift(stats2, params["bn2_gamma"],
                                     params["bn2_beta"], count=n * h2 * w2)

    # ---- BN2-apply + ReLU2: plain jnp, fused by XLA with the boundary
    #      reshape/transpose (no third kernel, no extra HBM round trip).
    out = jnp.maximum(y2.reshape(n, h2, w2, cout) * scale2 + shift2, 0.0)
    return jnp.transpose(out, (0, 3, 1, 2))                      # -> NCHW


# --------------------------------------------------------------------------
# Parameters + plain-JAX reference (self-check only).
# --------------------------------------------------------------------------
def init_params(key, in_channels, out_channels):
    """DoubleConv(in_channels, out_channels, kernelsize=in_channels//2); mid=out.
    Conv biases are omitted: each conv feeds training-mode BatchNorm, whose mean
    subtraction cancels a per-channel bias exactly (output unchanged).
    The Up(kernel_size=...) ctor arg is only used in the ConvTranspose path."""
    kd = in_channels // 2
    mid = out_channels
    ks = jax.random.split(key, 6)

    def rnd(k, shape, scale=0.1):
        return scale * jax.random.normal(k, shape, F32)

    return dict(
        conv1_w=rnd(ks[0], (kd, kd, in_channels, mid)),       # HWIO
        conv2_w=rnd(ks[1], (kd, kd, mid, out_channels)),      # HWIO
        bn1_gamma=1.0 + rnd(ks[2], (mid,)),
        bn1_beta=rnd(ks[3], (mid,)),
        bn2_gamma=1.0 + rnd(ks[4], (out_channels,)),
        bn2_beta=rnd(ks[5], (out_channels,)),
    )


def _reference_forward(params, x1_nchw, x2_nchw):
    """Plain-JAX/XLA reference of Up(bilinear=True) used only as a self-check."""
    n, c1, h1, w1 = x1_nchw.shape
    _, c2, h2, w2 = x2_nchw.shape
    hup, wup = 2 * h1, 2 * w1
    rh = _bilinear_matrix_align_corners(h1, hup)
    rw = _bilinear_matrix_align_corners(w1, wup)
    x1u = jnp.einsum('oh,nchw->ncow', rh, x1_nchw, precision='highest')
    x1u = jnp.einsum('pw,nchw->nchp', rw, x1u, precision='highest')
    dy, dx = h2 - hup, w2 - wup
    x1u = jnp.pad(x1u, ((0, 0), (0, 0), (dy // 2, dy - dy // 2), (dx // 2, dx - dx // 2)))
    x = jnp.transpose(jnp.concatenate([x2_nchw, x1u], axis=1), (0, 2, 3, 1))   # NHWC

    def conv_bn_relu(x, w, gamma, beta):
        p = (w.shape[0] - 1) // 2
        y = jax.lax.conv_general_dilated(
            x, w, window_strides=(1, 1), padding=[(p, p), (p, p)],
            dimension_numbers=('NHWC', 'HWIO', 'NHWC'),
            precision=jax.lax.Precision.HIGHEST)
        mean = jnp.mean(y, axis=(0, 1, 2))
        var = jnp.mean((y - mean) ** 2, axis=(0, 1, 2))
        return jnp.maximum((y - mean) * jax.lax.rsqrt(var + 1e-5) * gamma + beta, 0.0)

    x = conv_bn_relu(x, params["conv1_w"], params["bn1_gamma"], params["bn1_beta"])
    x = conv_bn_relu(x, params["conv2_w"], params["bn2_gamma"], params["bn2_beta"])
    return jnp.transpose(x, (0, 3, 1, 2))


if __name__ == "__main__":
    key = jax.random.PRNGKey(0)
    in_channels, out_channels = 6, 8          # DoubleConv kernel = in_channels // 2 = 3
    c1 = in_channels // 2                     # x1 (decoder) channels
    c2 = in_channels - c1                     # x2 (skip) channels; cat -> in_channels
    kp, k1, k2, k3, k4 = jax.random.split(key, 5)
    params = init_params(kp, in_channels, out_channels)

    fwd = jax.jit(up_forward, static_argnames=("max_images_per_step",))

    # Case A: 2x upsample matches the skip exactly (diffY = diffX = 0);
    # 4 images packed 2-per-step -> 2 'parallel' grid steps (megacore-friendly).
    n, h1, w1 = 4, 8, 8
    h2, w2 = 16, 16
    x1 = jax.random.normal(k1, (n, c1, h1, w1), F32)
    x2 = jax.random.normal(k2, (n, c2, h2, w2), F32)
    out = jax.block_until_ready(fwd(params, x1, x2, max_images_per_step=2))
    assert out.shape == (n, out_channels, h2, w2), out.shape
    assert bool(jnp.all(jnp.isfinite(out)))
    ref = _reference_forward(params, x1, x2)
    err_a = float(jnp.max(jnp.abs(out - ref)))
    assert err_a < 6e-2, f"case A mismatch: max abs err {err_a}"

    # Case B: odd decoder size -> exercises the F.pad fold (diffY = diffX = 2,
    # asymmetric padding folded into weight-row slices / staging row offsets).
    n, h1, w1 = 2, 7, 7
    x1 = jax.random.normal(k3, (n, c1, h1, w1), F32)
    x2 = jax.random.normal(k4, (n, c2, h2, w2), F32)
    out = jax.block_until_ready(fwd(params, x1, x2))
    assert out.shape == (n, out_channels, h2, w2), out.shape
    ref = _reference_forward(params, x1, x2)
    err_b = float(jnp.max(jnp.abs(out - ref)))
    assert err_b < 6e-2, f"case B mismatch: max abs err {err_b}"

    print("KERNEL_OK")
</pallas_src>

<mosaic_0001>
module attributes {stable_mosaic.version = 11 : i64} {
  func.func private @main(%arg0: i32) attributes {dimension_semantics = [#tpu.dimension_semantics<core_parallel>], iteration_bounds = array<i64: 2>, tpu.core_type = #tpu.core_type<sc_scalar_subcore>, window_params = []} {
    return
  }
}

module attributes {stable_mosaic.version = 11 : i64} {
  func.func private @main(%arg0: i32) attributes {dimension_semantics = [#tpu.dimension_semantics<core_parallel>], iteration_bounds = array<i64: 2>, tpu.core_type = #tpu.core_type<sc_scalar_subcore>, window_params = []} {
    return
  }
}

module attributes {stable_mosaic.version = 11 : i64} {
  func.func @_stage1_kernel(%arg0: i32, %arg1: memref<2x16x48xf32, #tpu.memory_space<vmem>>, %arg2: memref<2x8x24xf32, #tpu.memory_space<vmem>>, %arg3: memref<16x8xbf16, #tpu.memory_space<vmem>>, %arg4: memref<24x48xbf16, #tpu.memory_space<vmem>>, %arg5: memref<3x96x128xbf16, #tpu.memory_space<vmem>>, %arg6: memref<128x8xf32, #tpu.memory_space<vmem>>, %arg7: memref<2x16x128xf32, #tpu.memory_space<vmem>>, %arg8: memref<1x2x8xf32, #tpu.memory_space<vmem>>, %arg9: memref<48x96xf32, #tpu.memory_space<vmem>>) attributes {dimension_semantics = [#tpu.dimension_semantics<parallel>], iteration_bounds = array<i64: 2>, scalar_prefetch = 0 : i64, scratch_operands = 1 : i64, tpu.core_type = #tpu.core_type<tc>, window_params = [{transform_indices = @transform_0, window_bounds = array<i64: 2, 16, 48>}, {transform_indices = @transform_1, window_bounds = array<i64: 2, 8, 24>}, {pipeline_mode = #tpu.pipeline_mode<synchronous>, transform_indices = @transform_2, window_bounds = array<i64: 16, 8>}, {pipeline_mode = #tpu.pipeline_mode<synchronous>, transform_indices = @transform_3, window_bounds = array<i64: 24, 48>}, {pipeline_mode = #tpu.pipeline_mode<synchronous>, transform_indices = @transform_4, window_bounds = array<i64: 3, 96, 128>}, {pipeline_mode = #tpu.pipeline_mode<synchronous>, transform_indices = @transform_5, window_bounds = array<i64: 128, 8>}, {transform_indices = @transform_6, window_bounds = array<i64: 2, 16, 128>}, {transform_indices = @transform_7, window_bounds = array<i64: 1, 2, 8>}]} {
    %cst = arith.constant 0.000000e+00 : f32
    %0 = vector.broadcast %cst : f32 to vector<1x96xf32>
    %c0 = arith.constant 0 : index
    %c0_0 = arith.constant 0 : index
    %1 = vector.load %arg9[%c0, %c0_0] : memref<48x96xf32, #tpu.memory_space<vmem>>, vector<1x96xf32>
    tpu.vector_store %arg9[%c0, %c0_0], %0 {strides = array<i32>} : memref<48x96xf32, #tpu.memory_space<vmem>>, vector<1x96xf32>,
    %cst_1 = arith.constant 0.000000e+00 : f32
    %2 = vector.broadcast %cst_1 : f32 to vector<7x96xf32>
    %c17 = arith.constant 17 : index
    %c0_2 = arith.constant 0 : index
    %3 = vector.load %arg9[%c17, %c0_2] : memref<48x96xf32, #tpu.memory_space<vmem>>, vector<7x96xf32>
    tpu.vector_store %arg9[%c17, %c0_2], %2 {strides = array<i32>} : memref<48x96xf32, #tpu.memory_space<vmem>>, vector<7x96xf32>,
    %c0_3 = arith.constant 0 : index
    %c0_4 = arith.constant 0 : index
    %c0_5 = arith.constant 0 : index
    %4 = vector.load %arg1[%c0_3, %c0_4, %c0_5] : memref<2x16x48xf32, #tpu.memory_space<vmem>>, vector<1x16x48xf32>
    %5 = vector.shape_cast %4 : vector<1x16x48xf32> to vector<16x48xf32>
    %c1 = arith.constant 1 : index
    %c0_6 = arith.constant 0 : index
    %6 = vector.load %arg9[%c1, %c0_6] : memref<48x96xf32, #tpu.memory_space<vmem>>, vector<16x48xf32>
    tpu.vector_store %arg9[%c1, %c0_6], %5 {strides = array<i32>} : memref<48x96xf32, #tpu.memory_space<vmem>>, vector<16x48xf32>,
    %c0_7 = arith.constant 0 : index
    %c0_8 = arith.constant 0 : index
    %7 = vector.load %arg3[%c0_7, %c0_8] : memref<16x8xbf16, #tpu.memory_space<vmem>>, vector<16x8xbf16>
    %c0_9 = arith.constant 0 : index
    %c0_10 = arith.constant 0 : index
    %c0_11 = arith.constant 0 : index
    %8 = vector.load %arg2[%c0_9, %c0_10, %c0_11] : memref<2x8x24xf32, #tpu.memory_space<vmem>>, vector<1x8x24xf32>
    %9 = vector.shape_cast %8 : vector<1x8x24xf32> to vector<8x24xf32>
    %10 = arith.truncf %9 : vector<8x24xf32> to vector<8x24xbf16>
    %cst_12 = arith.constant dense<0.000000e+00> : vector<16x24xf32>
    %11 = tpu.matmul %7, %10, %cst_12 {dimension_numbers = #tpu.dot_dimension_numbers<[1], [0], [0], [1], [0, 0, 1, 1], [], []>} : vector<16x8xbf16>, vector<8x24xbf16>, vector<16x24xf32> -> vector<16x24xf32>
    %12 = arith.truncf %11 : vector<16x24xf32> to vector<16x24xbf16>
    %c0_13 = arith.constant 0 : index
    %c0_14 = arith.constant 0 : index
    %13 = vector.load %arg4[%c0_13, %c0_14] : memref<24x48xbf16, #tpu.memory_space<vmem>>, vector<24x48xbf16>
    %cst_15 = arith.constant dense<0.000000e+00> : vector<16x48xf32>
    %14 = tpu.matmul %12, %13, %cst_15 {dimension_numbers = #tpu.dot_dimension_numbers<[1], [0], [0], [1], [0, 0, 1, 1], [], []>} : vector<16x24xbf16>, vector<24x48xbf16>, vector<16x48xf32> -> vector<16x48xf32>
    %c1_16 = arith.constant 1 : index
    %c48 = arith.constant 48 : index
    %15 = vector.load %arg9[%c1_16, %c48] : memref<48x96xf32, #tpu.memory_space<vmem>>, vector<16x48xf32>
    tpu.vector_store %arg9[%c1_16, %c48], %14 {strides = array<i32>} : memref<48x96xf32, #tpu.memory_space<vmem>>, vector<16x48xf32>,
    %cst_17 = arith.constant 0.000000e+00 : f32
    %16 = vector.broadcast %cst_17 : f32 to vector<1x96xf32>
    %c24 = arith.constant 24 : index
    %c0_18 = arith.constant 0 : index
    %17 = vector.load %arg9[%c24, %c0_18] : memref<48x96xf32, #tpu.memory_space<vmem>>, vector<1x96xf32>
    tpu.vector_store %arg9[%c24, %c0_18], %16 {strides = array<i32>} : memref<48x96xf32, #tpu.memory_space<vmem>>, vector<1x96xf32>,
    %cst_19 = arith.constant 0.000000e+00 : f32
    %18 = vector.broadcast %cst_19 : f32 to vector<7x96xf32>
    %c41 = arith.constant 41 : index
    %c0_20 = arith.constant 0 : index
    %19 = vector.load %arg9[%c41, %c0_20] : memref<48x96xf32, #tpu.memory_space<vmem>>, vector<7x96xf32>
    tpu.vector_store %arg9[%c41, %c0_20], %18 {strides = array<i32>} : memref<48x96xf32, #tpu.memory_space<vmem>>, vector<7x96xf32>,
    %c1_21 = arith.constant 1 : index
    %c0_22 = arith.constant 0 : index
    %c0_23 = arith.constant 0 : index
    %20 = vector.load %arg1[%c1_21, %c0_22, %c0_23] : memref<2x16x48xf32, #tpu.memory_space<vmem>>, vector<1x16x48xf32>
    %21 = vector.shape_cast %20 : vector<1x16x48xf32> to vector<16x48xf32>
    %c25 = arith.constant 25 : index
    %c0_24 = arith.constant 0 : index
    %22 = vector.load %arg9[%c25, %c0_24] : memref<48x96xf32, #tpu.memory_space<vmem>>, vector<16x48xf32>
    tpu.vector_store %arg9[%c25, %c0_24], %21 {strides = array<i32>} : memref<48x96xf32, #tpu.memory_space<vmem>>, vector<16x48xf32>,
    %c0_25 = arith.constant 0 : index
    %c0_26 = arith.constant 0 : index
    %23 = vector.load %arg3[%c0_25, %c0_26] : memref<16x8xbf16, #tpu.memory_space<vmem>>, vector<16x8xbf16>
    %c1_27 = arith.constant 1 : index
    %c0_28 = arith.constant 0 : index
    %c0_29 = arith.constant 0 : index
    %24 = vector.load %arg2[%c1_27, %c0_28, %c0_29] : memref<2x8x24xf32, #tpu.memory_space<vmem>>, vector<1x8x24xf32>
    %25 = vector.shape_cast %24 : vector<1x8x24xf32> to vector<8x24xf32>
    %26 = arith.truncf %25 : vector<8x24xf32> to vector<8x24xbf16>
    %cst_30 = arith.constant dense<0.000000e+00> : vector<16x24xf32>
    %27 = tpu.matmul %23, %26, %cst_30 {dimension_numbers = #tpu.dot_dimension_numbers<[1], [0], [0], [1], [0, 0, 1, 1], [], []>} : vector<16x8xbf16>, vector<8x24xbf16>, vector<16x24xf32> -> vector<16x24xf32>
    %28 = arith.truncf %27 : vector<16x24xf32> to vector<16x24xbf16>
    %c0_31 = arith.constant 0 : index
    %c0_32 = arith.constant 0 : index
    %29 = vector.load %arg4[%c0_31, %c0_32] : memref<24x48xbf16, #tpu.memory_space<vmem>>, vector<24x48xbf16>
    %cst_33 = arith.constant dense<0.000000e+00> : vector<16x48xf32>
    %30 = tpu.matmul %28, %29, %cst_33 {dimension_numbers = #tpu.dot_dimension_numbers<[1], [0], [0], [1], [0, 0, 1, 1], [], []>} : vector<16x24xbf16>, vector<24x48xbf16>, vector<16x48xf32> -> vector<16x48xf32>
    %c25_34 = arith.constant 25 : index
    %c48_35 = arith.constant 48 : index
    %31 = vector.load %arg9[%c25_34, %c48_35] : memref<48x96xf32, #tpu.memory_space<vmem>>, vector<16x48xf32>
    tpu.vector_store %arg9[%c25_34, %c48_35], %30 {strides = array<i32>} : memref<48x96xf32, #tpu.memory_space<vmem>>, vector<16x48xf32>,
    %cst_36 = arith.constant 0.000000e+00 : f32
    %32 = vector.broadcast %cst_36 : f32 to vector<46x128xf32>
    %c0_37 = arith.constant 0 : index
    %c0_38 = arith.constant 0 : index
    %33 = vector.load %arg9[%c0_37, %c0_38] : memref<48x96xf32, #tpu.memory_space<vmem>>, vector<46x96xf32>
    %34 = arith.truncf %33 : vector<46x96xf32> to vector<46x96xbf16>
    %c0_39 = arith.constant 0 : index
    %c0_40 = arith.constant 0 : index
    %c0_41 = arith.constant 0 : index
    %35 = vector.load %arg5[%c0_39, %c0_40, %c0_41] : memref<3x96x128xbf16, #tpu.memory_space<vmem>>, vector<1x96x128xbf16>
    %36 = vector.shape_cast %35 : vector<1x96x128xbf16> to vector<96x128xbf16>
    %cst_42 = arith.constant dense<0.000000e+00> : vector<46x128xf32>
    %37 = tpu.matmul %34, %36, %cst_42 {dimension_numbers = #tpu.dot_dimension_numbers<[1], [0], [0], [1], [0, 0, 1, 1], [], []>} : vector<46x96xbf16>, vector<96x128xbf16>, vector<46x128xf32> -> vector<46x128xf32>
    %38 = arith.addf %32, %37 : vector<46x128xf32>
    %c1_43 = arith.constant 1 : index
    %c0_44 = arith.constant 0 : index
    %39 = vector.load %arg9[%c1_43, %c0_44] : memref<48x96xf32, #tpu.memory_space<vmem>>, vector<46x96xf32>
    %40 = arith.truncf %39 : vector<46x96xf32> to vector<46x96xbf16>
    %c1_45 = arith.constant 1 : index
    %c0_46 = arith.constant 0 : index
    %c0_47 = arith.constant 0 : index
    %41 = vector.load %arg5[%c1_45, %c0_46, %c0_47] : memref<3x96x128xbf16, #tpu.memory_space<vmem>>, vector<1x96x128xbf16>
    %42 = vector.shape_cast %41 : vector<1x96x128xbf16> to vector<96x128xbf16>
    %cst_48 = arith.constant dense<0.000000e+00> : vector<46x128xf32>
    %43 = tpu.matmul %40, %42, %cst_48 {dimension_numbers = #tpu.dot_dimension_numbers<[1], [0], [0], [1], [0, 0, 1, 1], [], []>} : vector<46x96xbf16>, vector<96x128xbf16>, vector<46x128xf32> -> vector<46x128xf32>
    %44 = arith.addf %38, %43 : vector<46x128xf32>
    %c2 = arith.constant 2 : index
    %c0_49 = arith.constant 0 : index
    %45 = vector.load %arg9[%c2, %c0_49] : memref<48x96xf32, #tpu.memory_space<vmem>>, vector<46x96xf32>
    %46 = arith.truncf %45 : vector<46x96xf32> to vector<46x96xbf16>
    %c2_50 = arith.constant 2 : index
    %c0_51 = arith.constant 0 : index
    %c0_52 = arith.constant 0 : index
    %47 = vector.load %arg5[%c2_50, %c0_51, %c0_52] : memref<3x96x128xbf16, #tpu.memory_space<vmem>>, vector<1x96x128xbf16>
    %48 = vector.shape_cast %47 : vector<1x96x128xbf16> to vector<96x128xbf16>
    %cst_53 = arith.constant dense<0.000000e+00> : vector<46x128xf32>
    %49 = tpu.matmul %46, %48, %cst_53 {dimension_numbers = #tpu.dot_dimension_numbers<[1], [0], [0], [1], [0, 0, 1, 1], [], []>} : vector<46x96xbf16>, vector<96x128xbf16>, vector<46x128xf32> -> vector<46x128xf32>
    %50 = arith.addf %44, %49 : vector<46x128xf32>
    %cst_54 = arith.constant 0.000000e+00 : f32
    %51 = vector.broadcast %cst_54 : f32 to vector<1x128xf32>
    %cst_55 = arith.constant 0.000000e+00 : f32
    %52 = vector.broadcast %cst_55 : f32 to vector<1x128xf32>
    %53 = vector.extract_strided_slice %50 {offsets = [0, 0], sizes = [16, 128], strides = [1, 1]} : vector<46x128xf32> to vector<16x128xf32>
    %c0_56 = arith.constant 0 : index
    %c0_57 = arith.constant 0 : index
    %c0_58 = arith.constant 0 : index
    %54 = vector.load %arg7[%c0_56, %c0_57, %c0_58] : memref<2x16x128xf32, #tpu.memory_space<vmem>>, vector<1x16x128xf32>
    %55 = vector.shape_cast %54 : vector<1x16x128xf32> to vector<16x128xf32>
    %56 = vector.shape_cast %53 : vector<16x128xf32> to vector<1x16x128xf32>
    tpu.vector_store %arg7[%c0_56, %c0_57, %c0_58], %56 {strides = array<i32>} : memref<2x16x128xf32, #tpu.memory_space<vmem>>, vector<1x16x128xf32>,
    %cst_59 = arith.constant dense<0.000000e+00> : vector<128xf32>
    %57 = vector.multi_reduction <add>, %53, %cst_59 [0] : vector<16x128xf32> to vector<128xf32>
    %58 = vector.shape_cast %57 : vector<128xf32> to vector<1x128xf32>
    %59 = arith.addf %51, %58 : vector<1x128xf32>
    %60 = arith.mulf %53, %53 : vector<16x128xf32>
    %cst_60 = arith.constant dense<0.000000e+00> : vector<128xf32>
    %61 = vector.multi_reduction <add>, %60, %cst_60 [0] : vector<16x128xf32> to vector<128xf32>
    %62 = vector.shape_cast %61 : vector<128xf32> to vector<1x128xf32>
    %63 = arith.addf %52, %62 : vector<1x128xf32>
    %64 = vector.extract_strided_slice %50 {offsets = [24, 0], sizes = [16, 128], strides = [1, 1]} : vector<46x128xf32> to vector<16x128xf32>
    %c1_61 = arith.constant 1 : index
    %c0_62 = arith.constant 0 : index
    %c0_63 = arith.constant 0 : index
    %65 = vector.load %arg7[%c1_61, %c0_62, %c0_63] : memref<2x16x128xf32, #tpu.memory_space<vmem>>, vector<1x16x128xf32>
    %66 = vector.shape_cast %65 : vector<1x16x128xf32> to vector<16x128xf32>
    %67 = vector.shape_cast %64 : vector<16x128xf32> to vector<1x16x128xf32>
    tpu.vector_store %arg7[%c1_61, %c0_62, %c0_63], %67 {strides = array<i32>} : memref<2x16x128xf32, #tpu.memory_space<vmem>>, vector<1x16x128xf32>,
    %cst_64 = arith.constant dense<0.000000e+00> : vector<128xf32>
    %68 = vector.multi_reduction <add>, %64, %cst_64 [0] : vector<16x128xf32> to vector<128xf32>
    %69 = vector.shape_cast %68 : vector<128xf32> to vector<1x128xf32>
    %70 = arith.addf %59, %69 : vector<1x128xf32>
    %71 = arith.mulf %64, %64 : vector<16x128xf32>
    %cst_65 = arith.constant dense<0.000000e+00> : vector<128xf32>
    %72 = vector.multi_reduction <add>, %71, %cst_65 [0] : vector<16x128xf32> to vector<128xf32>
    %73 = vector.shape_cast %72 : vector<128xf32> to vector<1x128xf32>
    %74 = arith.addf %63, %73 : vector<1x128xf32>
    %75 = tpu.concatenate %70, %74 in 0 : vector<1x128xf32>, vector<1x128xf32> -> vector<2x128xf32>
    %c0_66 = arith.constant 0 : index
    %c0_67 = arith.constant 0 : index
    %76 = vector.load %arg6[%c0_66, %c0_67] : memref<128x8xf32, #tpu.memory_space<vmem>>, vector<128x8xf32>
    %cst_68 = arith.constant dense<0.000000e+00> : vector<2x8xf32>
    %77 = tpu.matmul %75, %76, %cst_68 {dimension_numbers = #tpu.dot_dimension_numbers<[1], [0], [0], [1], [0, 0, 1, 1], [], []>} : vector<2x128xf32>, vector<128x8xf32>, vector<2x8xf32> -> vector<2x8xf32>
    %c0_69 = arith.constant 0 : index
    %c0_70 = arith.constant 0 : index
    %c0_71 = arith.constant 0 : index
    %78 = vector.load %arg8[%c0_69, %c0_70, %c0_71] : memref<1x2x8xf32, #tpu.memory_space<vmem>>, vector<1x2x8xf32>
    %79 = vector.shape_cast %78 : vector<1x2x8xf32> to vector<2x8xf32>
    %80 = vector.shape_cast %77 : vector<2x8xf32> to vector<1x2x8xf32>
    tpu.vector_store %arg8[%c0_69, %c0_70, %c0_71], %80 {strides = array<i32>} : memref<1x2x8xf32, #tpu.memory_space<vmem>>, vector<1x2x8xf32>,
    return
  }
  func.func @transform_0(%arg0: i32) -> (i32, i32, i32) {
    %c0_i32 = arith.constant 0 : i32
    %c0_i32_0 = arith.constant 0 : i32
    %c0_i32_1 = arith.constant 0 : i32
    return %arg0, %c0_i32, %c0_i32_0 : i32, i32, i32
  }
  func.func @transform_1(%arg0: i32) -> (i32, i32, i32) {
    %c0_i32 = arith.constant 0 : i32
    %c0_i32_0 = arith.constant 0 : i32
    %c0_i32_1 = arith.constant 0 : i32
    return %arg0, %c0_i32, %c0_i32_0 : i32, i32, i32
  }
  func.func @transform_2(%arg0: i32) -> (i32, i32) {
    %c0_i32 = arith.constant 0 : i32
    %c0_i32_0 = arith.constant 0 : i32
    %c0_i32_1 = arith.constant 0 : i32
    return %c0_i32, %c0_i32_0 : i32, i32
  }
  func.func @transform_3(%arg0: i32) -> (i32, i32) {
    %c0_i32 = arith.constant 0 : i32
    %c0_i32_0 = arith.constant 0 : i32
    %c0_i32_1 = arith.constant 0 : i32
    return %c0_i32, %c0_i32_0 : i32, i32
  }
  func.func @transform_4(%arg0: i32) -> (i32, i32, i32) {
    %c0_i32 = arith.constant 0 : i32
    %c0_i32_0 = arith.constant 0 : i32
    %c0_i32_1 = arith.constant 0 : i32
    %c0_i32_2 = arith.constant 0 : i32
    return %c0_i32, %c0_i32_0, %c0_i32_1 : i32, i32, i32
  }
  func.func @transform_5(%arg0: i32) -> (i32, i32) {
    %c0_i32 = arith.constant 0 : i32
    %c0_i32_0 = arith.constant 0 : i32
    %c0_i32_1 = arith.constant 0 : i32
    return %c0_i32, %c0_i32_0 : i32, i32
  }
  func.func @transform_6(%arg0: i32) -> (i32, i32, i32) {
    %c0_i32 = arith.constant 0 : i32
    %c0_i32_0 = arith.constant 0 : i32
    %c0_i32_1 = arith.constant 0 : i32
    return %arg0, %c0_i32, %c0_i32_0 : i32, i32, i32
  }
  func.func @transform_7(%arg0: i32) -> (i32, i32, i32) {
    %c0_i32 = arith.constant 0 : i32
    %c0_i32_0 = arith.constant 0 : i32
    %c0_i32_1 = arith.constant 0 : i32
    return %arg0, %c0_i32, %c0_i32_0 : i32, i32, i32
  }
}

module attributes {stable_mosaic.version = 11 : i64} {
  func.func @_stage2_kernel(%arg0: i32, %arg1: memref<2x16x128xf32, #tpu.memory_space<vmem>>, %arg2: memref<1x128xf32, #tpu.memory_space<vmem>>, %arg3: memref<1x128xf32, #tpu.memory_space<vmem>>, %arg4: memref<3x128x128xbf16, #tpu.memory_space<vmem>>, %arg5: memref<128x8xf32, #tpu.memory_space<vmem>>, %arg6: memref<2x16x128xf32, #tpu.memory_space<vmem>>, %arg7: memref<1x2x8xf32, #tpu.memory_space<vmem>>, %arg8: memref<48x128xf32, #tpu.memory_space<vmem>>) attributes {dimension_semantics = [#tpu.dimension_semantics<parallel>], iteration_bounds = array<i64: 2>, scalar_prefetch = 0 : i64, scratch_operands = 1 : i64, tpu.core_type = #tpu.core_type<tc>, window_params = [{transform_indices = @transform_0, window_bounds = array<i64: 2, 16, 128>}, {pipeline_mode = #tpu.pipeline_mode<synchronous>, transform_indices = @transform_1, window_bounds = array<i64: 1, 128>}, {pipeline_mode = #tpu.pipeline_mode<synchronous>, transform_indices = @transform_2, window_bounds = array<i64: 1, 128>}, {pipeline_mode = #tpu.pipeline_mode<synchronous>, transform_indices = @transform_3, window_bounds = array<i64: 3, 128, 128>}, {pipeline_mode = #tpu.pipeline_mode<synchronous>, transform_indices = @transform_4, window_bounds = array<i64: 128, 8>}, {transform_indices = @transform_5, window_bounds = array<i64: 2, 16, 128>}, {transform_indices = @transform_6, window_bounds = array<i64: 1, 2, 8>}]} {
    %cst = arith.constant 0.000000e+00 : f32
    %0 = vector.broadcast %cst : f32 to vector<1x128xf32>
    %c0 = arith.constant 0 : index
    %c0_0 = arith.constant 0 : index
    %1 = vector.load %arg8[%c0, %c0_0] : memref<48x128xf32, #tpu.memory_space<vmem>>, vector<1x128xf32>
    tpu.vector_store %arg8[%c0, %c0_0], %0 {strides = array<i32>} : memref<48x128xf32, #tpu.memory_space<vmem>>, vector<1x128xf32>,
    %cst_1 = arith.constant 0.000000e+00 : f32
    %2 = vector.broadcast %cst_1 : f32 to vector<7x128xf32>
    %c17 = arith.constant 17 : index
    %c0_2 = arith.constant 0 : index
    %3 = vector.load %arg8[%c17, %c0_2] : memref<48x128xf32, #tpu.memory_space<vmem>>, vector<7x128xf32>
    tpu.vector_store %arg8[%c17, %c0_2], %2 {strides = array<i32>} : memref<48x128xf32, #tpu.memory_space<vmem>>, vector<7x128xf32>,
    %c0_3 = arith.constant 0 : index
    %c0_4 = arith.constant 0 : index
    %c0_5 = arith.constant 0 : index
    %4 = vector.load %arg1[%c0_3, %c0_4, %c0_5] : memref<2x16x128xf32, #tpu.memory_space<vmem>>, vector<1x16x128xf32>
    %5 = vector.shape_cast %4 : vector<1x16x128xf32> to vector<16x128xf32>
    %c0_6 = arith.constant 0 : index
    %c0_7 = arith.constant 0 : index
    %6 = vector.load %arg2[%c0_6, %c0_7] : memref<1x128xf32, #tpu.memory_space<vmem>>, vector<1x128xf32>
    %7 = vector.broadcast %6 : vector<1x128xf32> to vector<16x128xf32>
    %8 = arith.mulf %5, %7 : vector<16x128xf32>
    %c0_8 = arith.constant 0 : index
    %c0_9 = arith.constant 0 : index
    %9 = vector.load %arg3[%c0_8, %c0_9] : memref<1x128xf32, #tpu.memory_space<vmem>>, vector<1x128xf32>
    %10 = vector.broadcast %9 : vector<1x128xf32> to vector<16x128xf32>
    %11 = arith.addf %8, %10 : vector<16x128xf32>
    %cst_10 = arith.constant 0.000000e+00 : f32
    %12 = vector.broadcast %cst_10 : f32 to vector<16x128xf32>
    %13 = arith.maximumf %11, %12 : vector<16x128xf32>
    %c1 = arith.constant 1 : index
    %c0_11 = arith.constant 0 : index
    %14 = vector.load %arg8[%c1, %c0_11] : memref<48x128xf32, #tpu.memory_space<vmem>>, vector<16x128xf32>
    tpu.vector_store %arg8[%c1, %c0_11], %13 {strides = array<i32>} : memref<48x128xf32, #tpu.memory_space<vmem>>, vector<16x128xf32>,
    %cst_12 = arith.constant 0.000000e+00 : f32
    %15 = vector.broadcast %cst_12 : f32 to vector<1x128xf32>
    %c24 = arith.constant 24 : index
    %c0_13 = arith.constant 0 : index
    %16 = vector.load %arg8[%c24, %c0_13] : memref<48x128xf32, #tpu.memory_space<vmem>>, vector<1x128xf32>
    tpu.vector_store %arg8[%c24, %c0_13], %15 {strides = array<i32>} : memref<48x128xf32, #tpu.memory_space<vmem>>, vector<1x128xf32>,
    %cst_14 = arith.constant 0.000000e+00 : f32
    %17 = vector.broadcast %cst_14 : f32 to vector<7x128xf32>
    %c41 = arith.constant 41 : index
    %c0_15 = arith.constant 0 : index
    %18 = vector.load %arg8[%c41, %c0_15] : memref<48x128xf32, #tpu.memory_space<vmem>>, vector<7x128xf32>
    tpu.vector_store %arg8[%c41, %c0_15], %17 {strides = array<i32>} : memref<48x128xf32, #tpu.memory_space<vmem>>, vector<7x128xf32>,
    %c1_16 = arith.constant 1 : index
    %c0_17 = arith.constant 0 : index
    %c0_18 = arith.constant 0 : index
    %19 = vector.load %arg1[%c1_16, %c0_17, %c0_18] : memref<2x16x128xf32, #tpu.memory_space<vmem>>, vector<1x16x128xf32>
    %20 = vector.shape_cast %19 : vector<1x16x128xf32> to vector<16x128xf32>
    %c0_19 = arith.constant 0 : index
    %c0_20 = arith.constant 0 : index
    %21 = vector.load %arg2[%c0_19, %c0_20] : memref<1x128xf32, #tpu.memory_space<vmem>>, vector<1x128xf32>
    %22 = vector.broadcast %21 : vector<1x128xf32> to vector<16x128xf32>
    %23 = arith.mulf %20, %22 : vector<16x128xf32>
    %c0_21 = arith.constant 0 : index
    %c0_22 = arith.constant 0 : index
    %24 = vector.load %arg3[%c0_21, %c0_22] : memref<1x128xf32, #tpu.memory_space<vmem>>, vector<1x128xf32>
    %25 = vector.broadcast %24 : vector<1x128xf32> to vector<16x128xf32>
    %26 = arith.addf %23, %25 : vector<16x128xf32>
    %cst_23 = arith.constant 0.000000e+00 : f32
    %27 = vector.broadcast %cst_23 : f32 to vector<16x128xf32>
    %28 = arith.maximumf %26, %27 : vector<16x128xf32>
    %c25 = arith.constant 25 : index
    %c0_24 = arith.constant 0 : index
    %29 = vector.load %arg8[%c25, %c0_24] : memref<48x128xf32, #tpu.memory_space<vmem>>, vector<16x128xf32>
    tpu.vector_store %arg8[%c25, %c0_24], %28 {strides = array<i32>} : memref<48x128xf32, #tpu.memory_space<vmem>>, vector<16x128xf32>,
    %cst_25 = arith.constant 0.000000e+00 : f32
    %30 = vector.broadcast %cst_25 : f32 to vector<46x128xf32>
    %c0_26 = arith.constant 0 : index
    %c0_27 = arith.constant 0 : index
    %31 = vector.load %arg8[%c0_26, %c0_27] : memref<48x128xf32, #tpu.memory_space<vmem>>, vector<46x128xf32>
    %32 = arith.truncf %31 : vector<46x128xf32> to vector<46x128xbf16>
    %c0_28 = arith.constant 0 : index
    %c0_29 = arith.constant 0 : index
    %c0_30 = arith.constant 0 : index
    %33 = vector.load %arg4[%c0_28, %c0_29, %c0_30] : memref<3x128x128xbf16, #tpu.memory_space<vmem>>, vector<1x128x128xbf16>
    %34 = vector.shape_cast %33 : vector<1x128x128xbf16> to vector<128x128xbf16>
    %cst_31 = arith.constant dense<0.000000e+00> : vector<46x128xf32>
    %35 = tpu.matmul %32, %34, %cst_31 {dimension_numbers = #tpu.dot_dimension_numbers<[1], [0], [0], [1], [0, 0, 1, 1], [], []>} : vector<46x128xbf16>, vector<128x128xbf16>, vector<46x128xf32> -> vector<46x128xf32>
    %36 = arith.addf %30, %35 : vector<46x128xf32>
    %c1_32 = arith.constant 1 : index
    %c0_33 = arith.constant 0 : index
    %37 = vector.load %arg8[%c1_32, %c0_33] : memref<48x128xf32, #tpu.memory_space<vmem>>, vector<46x128xf32>
    %38 = arith.truncf %37 : vector<46x128xf32> to vector<46x128xbf16>
    %c1_34 = arith.constant 1 : index
    %c0_35 = arith.constant 0 : index
    %c0_36 = arith.constant 0 : index
    %39 = vector.load %arg4[%c1_34, %c0_35, %c0_36] : memref<3x128x128xbf16, #tpu.memory_space<vmem>>, vector<1x128x128xbf16>
    %40 = vector.shape_cast %39 : vector<1x128x128xbf16> to vector<128x128xbf16>
    %cst_37 = arith.constant dense<0.000000e+00> : vector<46x128xf32>
    %41 = tpu.matmul %38, %40, %cst_37 {dimension_numbers = #tpu.dot_dimension_numbers<[1], [0], [0], [1], [0, 0, 1, 1], [], []>} : vector<46x128xbf16>, vector<128x128xbf16>, vector<46x128xf32> -> vector<46x128xf32>
    %42 = arith.addf %36, %41 : vector<46x128xf32>
    %c2 = arith.constant 2 : index
    %c0_38 = arith.constant 0 : index
    %43 = vector.load %arg8[%c2, %c0_38] : memref<48x128xf32, #tpu.memory_space<vmem>>, vector<46x128xf32>
    %44 = arith.truncf %43 : vector<46x128xf32> to vector<46x128xbf16>
    %c2_39 = arith.constant 2 : index
    %c0_40 = arith.constant 0 : index
    %c0_41 = arith.constant 0 : index
    %45 = vector.load %arg4[%c2_39, %c0_40, %c0_41] : memref<3x128x128xbf16, #tpu.memory_space<vmem>>, vector<1x128x128xbf16>
    %46 = vector.shape_cast %45 : vector<1x128x128xbf16> to vector<128x128xbf16>
    %cst_42 = arith.constant dense<0.000000e+00> : vector<46x128xf32>
    %47 = tpu.matmul %44, %46, %cst_42 {dimension_numbers = #tpu.dot_dimension_numbers<[1], [0], [0], [1], [0, 0, 1, 1], [], []>} : vector<46x128xbf16>, vector<128x128xbf16>, vector<46x128xf32> -> vector<46x128xf32>
    %48 = arith.addf %42, %47 : vector<46x128xf32>
    %cst_43 = arith.constant 0.000000e+00 : f32
    %49 = vector.broadcast %cst_43 : f32 to vector<1x128xf32>
    %cst_44 = arith.constant 0.000000e+00 : f32
    %50 = vector.broadcast %cst_44 : f32 to vector<1x128xf32>
    %51 = vector.extract_strided_slice %48 {offsets = [0, 0], sizes = [16, 128], strides = [1, 1]} : vector<46x128xf32> to vector<16x128xf32>
    %c0_45 = arith.constant 0 : index
    %c0_46 = arith.constant 0 : index
    %c0_47 = arith.constant 0 : index
    %52 = vector.load %arg6[%c0_45, %c0_46, %c0_47] : memref<2x16x128xf32, #tpu.memory_space<vmem>>, vector<1x16x128xf32>
    %53 = vector.shape_cast %52 : vector<1x16x128xf32> to vector<16x128xf32>
    %54 = vector.shape_cast %51 : vector<16x128xf32> to vector<1x16x128xf32>
    tpu.vector_store %arg6[%c0_45, %c0_46, %c0_47], %54 {strides = array<i32>} : memref<2x16x128xf32, #tpu.memory_space<vmem>>, vector<1x16x128xf32>,
    %cst_48 = arith.constant dense<0.000000e+00> : vector<128xf32>
    %55 = vector.multi_reduction <add>, %51, %cst_48 [0] : vector<16x128xf32> to vector<128xf32>
    %56 = vector.shape_cast %55 : vector<128xf32> to vector<1x128xf32>
    %57 = arith.addf %49, %56 : vector<1x128xf32>
    %58 = arith.mulf %51, %51 : vector<16x128xf32>
    %cst_49 = arith.constant dense<0.000000e+00> : vector<128xf32>
    %59 = vector.multi_reduction <add>, %58, %cst_49 [0] : vector<16x128xf32> to vector<128xf32>
    %60 = vector.shape_cast %59 : vector<128xf32> to vector<1x128xf32>
    %61 = arith.addf %50, %60 : vector<1x128xf32>
    %62 = vector.extract_strided_slice %48 {offsets = [24, 0], sizes = [16, 128], strides = [1, 1]} : vector<46x128xf32> to vector<16x128xf32>
    %c1_50 = arith.constant 1 : index
    %c0_51 = arith.constant 0 : index
    %c0_52 = arith.constant 0 : index
    %63 = vector.load %arg6[%c1_50, %c0_51, %c0_52] : memref<2x16x128xf32, #tpu.memory_space<vmem>>, vector<1x16x128xf32>
    %64 = vector.shape_cast %63 : vector<1x16x128xf32> to vector<16x128xf32>
    %65 = vector.shape_cast %62 : vector<16x128xf32> to vector<1x16x128xf32>
    tpu.vector_store %arg6[%c1_50, %c0_51, %c0_52], %65 {strides = array<i32>} : memref<2x16x128xf32, #tpu.memory_space<vmem>>, vector<1x16x128xf32>,
    %cst_53 = arith.constant dense<0.000000e+00> : vector<128xf32>
    %66 = vector.multi_reduction <add>, %62, %cst_53 [0] : vector<16x128xf32> to vector<128xf32>
    %67 = vector.shape_cast %66 : vector<128xf32> to vector<1x128xf32>
    %68 = arith.addf %57, %67 : vector<1x128xf32>
    %69 = arith.mulf %62, %62 : vector<16x128xf32>
    %cst_54 = arith.constant dense<0.000000e+00> : vector<128xf32>
    %70 = vector.multi_reduction <add>, %69, %cst_54 [0] : vector<16x128xf32> to vector<128xf32>
    %71 = vector.shape_cast %70 : vector<128xf32> to vector<1x128xf32>
    %72 = arith.addf %61, %71 : vector<1x128xf32>
    %73 = tpu.concatenate %68, %72 in 0 : vector<1x128xf32>, vector<1x128xf32> -> vector<2x128xf32>
    %c0_55 = arith.constant 0 : index
    %c0_56 = arith.constant 0 : index
    %74 = vector.load %arg5[%c0_55, %c0_56] : memref<128x8xf32, #tpu.memory_space<vmem>>, vector<128x8xf32>
    %cst_57 = arith.constant dense<0.000000e+00> : vector<2x8xf32>
    %75 = tpu.matmul %73, %74, %cst_57 {dimension_numbers = #tpu.dot_dimension_numbers<[1], [0], [0], [1], [0, 0, 1, 1], [], []>} : vector<2x128xf32>, vector<128x8xf32>, vector<2x8xf32> -> vector<2x8xf32>
    %c0_58 = arith.constant 0 : index
    %c0_59 = arith.constant 0 : index
    %c0_60 = arith.constant 0 : index
    %76 = vector.load %arg7[%c0_58, %c0_59, %c0_60] : memref<1x2x8xf32, #tpu.memory_space<vmem>>, vector<1x2x8xf32>
    %77 = vector.shape_cast %76 : vector<1x2x8xf32> to vector<2x8xf32>
    %78 = vector.shape_cast %75 : vector<2x8xf32> to vector<1x2x8xf32>
    tpu.vector_store %arg7[%c0_58, %c0_59, %c0_60], %78 {strides = array<i32>} : memref<1x2x8xf32, #tpu.memory_space<vmem>>, vector<1x2x8xf32>,
    return
  }
  func.func @transform_0(%arg0: i32) -> (i32, i32, i32) {
    %c0_i32 = arith.constant 0 : i32
    %c0_i32_0 = arith.constant 0 : i32
    %c0_i32_1 = arith.constant 0 : i32
    return %arg0, %c0_i32, %c0_i32_0 : i32, i32, i32
  }
  func.func @transform_1(%arg0: i32) -> (i32, i32) {
    %c0_i32 = arith.constant 0 : i32
    %c0_i32_0 = arith.constant 0 : i32
    %c0_i32_1 = arith.constant 0 : i32
    return %c0_i32, %c0_i32_0 : i32, i32
  }
  func.func @transform_2(%arg0: i32) -> (i32, i32) {
    %c0_i32 = arith.constant 0 : i32
    %c0_i32_0 = arith.constant 0 : i32
    %c0_i32_1 = arith.constant 0 : i32
    return %c0_i32, %c0_i32_0 : i32, i32
  }
  func.func @transform_3(%arg0: i32) -> (i32, i32, i32) {
    %c0_i32 = arith.constant 0 : i32
    %c0_i32_0 = arith.constant 0 : i32
    %c0_i32_1 = arith.constant 0 : i32
    %c0_i32_2 = arith.constant 0 : i32
    return %c0_i32, %c0_i32_0, %c0_i32_1 : i32, i32, i32
  }
  func.func @transform_4(%arg0: i32) -> (i32, i32) {
    %c0_i32 = arith.constant 0 : i32
    %c0_i32_0 = arith.constant 0 : i32
    %c0_i32_1 = arith.constant 0 : i32
    return %c0_i32, %c0_i32_0 : i32, i32
  }
  func.func @transform_5(%arg0: i32) -> (i32, i32, i32) {
    %c0_i32 = arith.constant 0 : i32
    %c0_i32_0 = arith.constant 0 : i32
    %c0_i32_1 = arith.constant 0 : i32
    return %arg0, %c0_i32, %c0_i32_0 : i32, i32, i32
  }
  func.func @transform_6(%arg0: i32) -> (i32, i32, i32) {
    %c0_i32 = arith.constant 0 : i32
    %c0_i32_0 = arith.constant 0 : i32
    %c0_i32_1 = arith.constant 0 : i32
    return %arg0, %c0_i32, %c0_i32_0 : i32, i32, i32
  }
}

</mosaic_0001>

<bundles_post_ra>
// kernel: tile.13
= control target key start
LH: loop header
LB: loop body
LE: loop exit
PB: predicated region body
PF: predicated region fallthrough
CT: control target
= control target key end

     0   :  { %s28_s0 = inlined_call_operand.vmem [shape: f32[8], index: 0, kind: input, shape index: {}]   ;;  %s29_s1 = inlined_call_operand.vmem [shape: f32[16,8], index: 1, kind: output, shape index: {}]  }
   0x1   :  { %v4_v0 = vld [vmem:[%s28_s0] ss:$0 sm:$0xff] }
   0x2   :  { %5 = vst [vmem:[%s29_s1] sm:$0xff] %v4_v0  ;;  %8 = vst [vmem:[%s29_s1 + $0x8] sm:$0xff] %v4_v0 }

// kernel: tile.14
= control target key start
LH: loop header
LB: loop body
LE: loop exit
PB: predicated region body
PF: predicated region fallthrough
CT: control target
= control target key end

     0   :  { %s167_s10 = smov 120   ;;  %s168_s11 = smov 104   ;;  %vm4_vm0 = vcmask 64512   ;;  %s253_s0 = inlined_call_operand.vmem [shape: f32[16,8], index: 0, kind: input, shape index: {}]   ;;  %s254_s1 = inlined_call_operand.hbm [shape: f32[1,128], index: 1, kind: output, shape index: {}]  }
   0x1   :  { %v112_v0 = vld [vmem:[%s253_s0 + $0xf] sm:$0x1]   ;;  %v114_v1 = vld [vmem:[%s253_s0 + $0xd] sm:$0x1]   ;;  %v113_v2 = vld [vmem:[%s253_s0 + $0xe] sm:$0x1]  }
   0x2   :  { %8 = vrot.lane.b32.xlu0 %v112_v0, %s167_s10  ;;  %20 = vrot.lane.b32.xlu1 %v114_v1, %s168_s11  ;;  %v115_v3 = vld [vmem:[%s253_s0 + $0xc] sm:$0x1]   ;;  %s169_s16 = smov 112   ;;  %s170_s17 = smov 96   ;;  %v116_v4 = vld [vmem:[%s253_s0 + $0xb] sm:$0x1]  }
   0x3   :  { %v117_v5 = vld [vmem:[%s253_s0 + $0xa] sm:$0x1]   ;;  %v3_v6 = vld [vmem:[%s253_s0] sm:$0x1]  }
   0x6   :  { %14 = vrot.lane.b32.xlu0 %v113_v2, %s169_s16  ;;  %26 = vrot.lane.b32.xlu1 %v115_v3, %s170_s17 }
   0x7   :  { %2 = vsyncpa [#allocation1], 0  ;;  %s171_s24 = smov 88   ;;  %s172_s25 = smov 80   ;;  %5 = vst.msk [vmem:[#allocation2] sm:$0x1] %vm4_vm0, %v3_v6  }
   0x8   :  { %v118_v7 = vld [vmem:[%s253_s0 + $0x9] sm:$0x1]   ;;  %v119_v8 = vld [vmem:[%s253_s0 + $0x8] sm:$0x1]   ;;  %s173_s30 = smov 72   ;;  %s174_s2 = smov 64  }
   0x9   :  { %v120_v9 = vld [vmem:[%s253_s0 + $0x7] sm:$0x1]   ;;  %v121_v10 = vld [vmem:[%s253_s0 + $0x6] sm:$0x1]   ;;  %s175_s7 = smov 56   ;;  %s176_s8 = smov 48  }
   0xa   :  { %32 = vrot.lane.b32.xlu0 %v116_v4, %s171_s24  ;;  %38 = vrot.lane.b32.xlu1 %v117_v5, %s172_s25  ;;  %v122_v11 = vld [vmem:[%s253_s0 + $0x5] sm:$0x1]   ;;  %v123_v12 = vld [vmem:[%s253_s0 + $0x4] sm:$0x1]   ;;  %s177_s13 = smov 40   ;;  %s178_s14 = smov 32  }
   0xb   :  { %v124_v13 = vld [vmem:[%s253_s0 + $0x3] sm:$0x1]   ;;  %v125_v14 = vld [vmem:[%s253_s0 + $0x2] sm:$0x1]   ;;  %s179_s19 = smov 24   ;;  %s180_s20 = smov 16  }
   0xc   :  { %v126_v15 = vld [vmem:[%s253_s0 + $0x1] sm:$0x1]   ;;  %s181_s0 = smov 8   ;;  %vm10_vm1 = vcmask 1048512   ;;  %vm16_vm2 = vcmask 982912   ;;  %vm22_vm3 = vcmask 917312  }
   0xd   :  { %vm28_vm4 = vcmask 851712   ;;  %vm34_vm5 = vcmask 786112   ;;  %vm40_vm6 = vcmask 720512   ;;  %vm46_vm7 = vcmask 654912   ;;  %s182_s23 = smov [#allocation0]  }
   0xe   :  { %44 = vrot.lane.b32.xlu0 %v118_v7, %s173_s30  ;;  %50 = vrot.lane.b32.xlu1 %v119_v8, %s174_s2  ;;  %vm52_vm8 = vcmask 589312   ;;  %vm58_vm9 = vcmask 523712   ;;  %vm64_vm10 = vcmask 458112   ;;  %vm70_vm11 = vcmask 392512   ;;  %s106_s24 = sshll.u32 %s182_s23, 4  ;;  %s107_s24 = int_to_ptr.vmem [resolvable:$true] %s106_s24 }
   0xf   :  { %vm76_vm12 = vcmask 326912   ;;  %vm82_vm13 = vcmask 261312   ;;  %vm88_vm14 = vcmask 195712   ;;  %vm94_vm15 = vcmask 130112   ;;  %s143_s25 = scalar_lea.vmem %s107_s24, 16  ;;  %s147_s26 = scalar_lea.vmem %s107_s24, 32 }
  0x10   :  { %p144_p0 = scmp.ne.s32.totalorder %s107_s24, %s143_s25  ;;  %p148_p1 = scmp.lt.s32.totalorder %s107_s24, %s107_s24 }
  0x11   :  { %p149_p2 = scmp.lt.s32.totalorder %s147_s26, %s143_s25 }
  0x12   :  { %56 = vrot.lane.b32.xlu0 %v120_v9, %s175_s7  ;;  %62 = vrot.lane.b32.xlu1 %v121_v10, %s176_s8 }
  0x13   :  { %p150_p3 = por %p149_p2, %p148_p1 }
  0x15   :  { %p151_p4 = pnand %p150_p3, %p144_p0 }
  0x16   :  { %68 = vrot.lane.b32.xlu0 %v122_v11, %s177_s13  ;;  %74 = vrot.lane.b32.xlu1 %v123_v12, %s178_s14 }
  0x1a   :  { %80 = vrot.lane.b32.xlu0 %v124_v13, %s179_s19  ;;  %86 = vrot.lane.b32.xlu1 %v125_v14, %s180_s20 }
  0x1e   :  { %92 = vrot.lane.b32.xlu0 %v126_v15, %s181_s0 }
  0x74   :  { %v9_v16 = vpop.permute.xlu0 %8   ;;  %v21_v17 = vpop.permute.xlu1 %20  }
  0x75   :  { %11 = vst.msk [vmem:[#allocation2] sm:$0x1] %vm10_vm1, %v9_v16  }
  0x78   :  { %v15_v18 = vpop.permute.xlu0 %14   ;;  %v27_v19 = vpop.permute.xlu1 %26  }
  0x79   :  { %17 = vst.msk [vmem:[#allocation2] sm:$0x1] %vm16_vm2, %v15_v18  }
  0x7a   :  { %23 = vst.msk [vmem:[#allocation2] sm:$0x1] %vm22_vm3, %v21_v17  }
  0x7b   :  { %29 = vst.msk [vmem:[#allocation2] sm:$0x1] %vm28_vm4, %v27_v19  }
  0x7c   :  { %v33_v20 = vpop.permute.xlu0 %32   ;;  %v39_v21 = vpop.permute.xlu1 %38  }
  0x7d   :  { %35 = vst.msk [vmem:[#allocation2] sm:$0x1] %vm34_vm5, %v33_v20  }
  0x7e   :  { %41 = vst.msk [vmem:[#allocation2] sm:$0x1] %vm40_vm6, %v39_v21  }
  0x80   :  { %v45_v22 = vpop.permute.xlu0 %44   ;;  %v51_v23 = vpop.permute.xlu1 %50  }
  0x81   :  { %47 = vst.msk [vmem:[#allocation2] sm:$0x1] %vm46_vm7, %v45_v22  }
  0x82   :  { %53 = vst.msk [vmem:[#allocation2] sm:$0x1] %vm52_vm8, %v51_v23  }
  0x84   :  { %v57_v24 = vpop.permute.xlu0 %56   ;;  %v63_v25 = vpop.permute.xlu1 %62  }
  0x85   :  { %59 = vst.msk [vmem:[#allocation2] sm:$0x1] %vm58_vm9, %v57_v24  }
  0x86   :  { %65 = vst.msk [vmem:[#allocation2] sm:$0x1] %vm64_vm10, %v63_v25  }
  0x88   :  { %v69_v26 = vpop.permute.xlu0 %68   ;;  %v75_v27 = vpop.permute.xlu1 %74  }
  0x89   :  { %71 = vst.msk [vmem:[#allocation2] sm:$0x1] %vm70_vm11, %v69_v26  }
  0x8a   :  { %77 = vst.msk [vmem:[#allocation2] sm:$0x1] %vm76_vm12, %v75_v27  }
  0x8c   :  { %v81_v28 = vpop.permute.xlu0 %80   ;;  %v87_v29 = vpop.permute.xlu1 %86  }
  0x8d   :  { %83 = vst.msk [vmem:[#allocation2] sm:$0x1] %vm82_vm13, %v81_v28  }
  0x8e   :  { %89 = vst.msk [vmem:[#allocation2] sm:$0x1] %vm88_vm14, %v87_v29  }
  0x90   :  { %v93_v30 = vpop.permute.xlu0 %92  }
  0x91   :  { %95 = vst.msk [vmem:[#allocation2] sm:$0x1] %vm94_vm15, %v93_v30  }
  0x98   :  { %v99_v31 = vld [vmem:[#allocation2] sm:$0x1] }
  0x99   :  { %101 = vst [vmem:[#allocation0] sm:$0x1] %v99_v31 }
  0x9a   :  { %154 = shalt.err (!%p151_p4)
}
  0x9b   :  { %s155_s29 = scalar_lea.hbm %s254_s1, 16 }
  0x9c   :  { %p156_p5 = scmp.ne.s32.totalorder %s254_s1, %s155_s29  ;;  %p159_p6 = scmp.lt.u32.totalorder %s155_s29, %s254_s1 }
  0x9e   :  { %p161_p7 = pnand %p159_p6, %p156_p5 }
  0xa0   :  { %164 = shalt.err (!%p161_p7)
}
  0xa1   :  { %109 = dma.vmem_to_hbm [thread:$0]  %s107_s24, 16, %s254_s1, [#allocation1]  }
  0xa2   :  { %165 = dma.done.wait [#allocation1], 16  }
  0xa3   :  { %166 = vsyncadd [#allocation1], 4294967280 }
  0xa4   :  { %111 = vsyncpa [#allocation1], 1 }

// kernel: up_forward.2
= control target key start
LH: loop header
LB: loop body
LE: loop exit
PB: predicated region body
PF: predicated region fallthrough
CT: control target
= control target key end

     0   :  { %s2639_s0 = inlined_call_operand.hbm [shape: f32[4,16,48], index: 0, kind: input, shape index: {}]   ;;  %s2640_s1 = inlined_call_operand.hbm [shape: f32[4,8,24], index: 1, kind: input, shape index: {}]   ;;  %s2641_s2 = inlined_call_operand.hbm [shape: bf16[16,8], index: 2, kind: input, shape index: {}]   ;;  %s2642_s3 = inlined_call_operand.hbm [shape: bf16[24,48], index: 3, kind: input, shape index: {}]   ;;  %s2643_s4 = inlined_call_operand.hbm [shape: bf16[3,96,128], index: 4, kind: input, shape index: {}]   ;;  %s2644_s5 = inlined_call_operand.hbm [shape: f32[128,8], index: 5, kind: input, shape index: {}]   ;;  %s2645_s6 = inlined_call_operand.hbm [shape: f32[4,16,128], index: 6, kind: output, shape index: {0}]   ;;  %s2646_s7 = inlined_call_operand.hbm [shape: f32[2,2,8], index: 7, kind: output, shape index: {1}]  }
   0x1   :  { %2655 = sst [smem:[#allocation25_spill]] %s2639_s0 }
   0x2   :  { %2656 = sst [smem:[#allocation26_spill]] %s2641_s2 }
   0x3   :  { %2657 = sst [smem:[#allocation27_spill]] %s2642_s3 }
   0x4   :  { %2658 = sst [smem:[#allocation28_spill]] %s2643_s4 }
   0x5   :  { %13 = vsyncpa [#allocation4], 0 }
   0x6   :  { %15 = vsyncpa [#allocation4 + $0x1], 0 }
   0x7   :  { %16 = vsyncpa [#allocation7], 0 }
   0x8   :  { %18 = vsyncpa [#allocation7 + $0x1], 0 }
   0x9   :  { %19 = vsyncpa [#allocation10], 0 }
   0xa   :  { %20 = vsyncpa [#allocation13], 0 }
   0xb   :  { %21 = vsyncpa [#allocation5], 0 }
   0xc   :  { %23 = vsyncpa [#allocation5 + $0x1], 0 }
   0xd   :  { %24 = vsyncpa [#allocation16], 0 }
   0xe   :  { %26 = vsyncpa [#allocation16 + $0x1], 0  ;;  %s2168_s24 = smov 0   ;;  %s2170_s25 = smov 0  }
   0xf   :  { %s2172_s26 = smov 0   ;;  %s2174_s27 = smov 0  }
  0x10 LB: > { %s2189_s28 = sadd.s32 4294967295, %s2108_s27   ;;  %s1384_s29 = sadd.s32 4294967294, %s2108_s27   ;;  %s2108_s27 = sphi %s2174_s27, %s2689_s27   ;;  %s2104_s26 = sphi %s2172_s26, %s2688_s26   ;;  %s2100_s25 = sphi %s2170_s25, %s2687_s25   ;;  %s2096_s24 = sphi %s2168_s24, %s2686_s24  }
  0x11   : > { %p52_p0 = scmp.ne.s32.totalorder %s2100_s25, %s2096_s24  ;;  %p2647_p1 = scmp.eq.s32.totalorder %s2189_s28, 0 }
  0x12   : > { %p192_p3 = scmp.eq.s32.totalorder %s1384_s29, 1  ;;  %p1385_p5 = scmp.ge.s32.totalorder %s2108_s27, 1 }
  0x13   : > { %p2198_p4 = por %p2647_p1, %p52_p0  ;;  %p225_p7 = scmp.lt.s32.totalorder %s2108_s27, 3 }
  0x14   : > { %p2203_p6 = por %p192_p3, %p52_p0  ;;  %s2110_s10 = smov [#allocation8]  }
  0x15   : > { %s2659_s30 = scalar_select %p2198_p4, 1, 0 }
  0x16   : > { %s2660_s8 = scalar_select %p2203_p6, 1, 0 }
  0x17   : > { %p2208_p8 = pnand %p1385_p5, %p225_p7  ;;  %s237_s11 = sshll.u32 %s2110_s10, 4  ;;  %s2212_s11 = int_to_ptr.vmem [resolvable:$true] %s237_s11 }
  0x18   : > { %2661 = sst [smem:[#allocation24_spill]] %s2660_s8  ;;  %s2111_s13 = smov [#allocation9]  }
  0x19   : > { %s2662_s9 = scalar_select %p2208_p8, 1, 0 }
  0x1a   : > { %p1715_p9 = pneg %p2208_p8  ;;  %s250_s14 = sshll.u32 %s2111_s13, 4  ;;  %s2223_s14 = int_to_ptr.vmem [resolvable:$true] %s250_s14 }
  0x1b   : > { %s2112_s15 = smov [#allocation11]   ;;  %s2664_s2 = sld [smem:[#allocation26_spill]] }
  0x1c   : > { %p2219_p11 = pnand %p1715_p9, %p2647_p1  ;;  %s2225_s16 = sshll.u32 %s2112_s15, 4  ;;  %s264_s16 = int_to_ptr.vmem [resolvable:$true] %s2225_s16 }
  0x1e   : > { %p2235_p13 = pneg %p2219_p11 }
  0x21   : > { %s1822_s19 = scalar_lea.hbm %s2664_s2, 128 }
  0x22   : > { %p1823_p12 = scmp.ne.s32.totalorder %s2664_s2, %s1822_s19  ;;  %p1829_p5 = scmp.lt.u32.totalorder %s1822_s19, %s2664_s2 }
  0x24   : > { %p1825_p0 = pnand %p2235_p13, %p1823_p12 }
  0x26   : > { %p1826_p3 = pneg %p1825_p0 }
  0x28   : > { %p1831_p7 = pnand %p1829_p5, %p1826_p3 }
  0x2a   : > { %1834 = shalt.err (!%p1831_p7)
}
  0x2b   : > { %s1835_s10 = scalar_lea.vmem %s2212_s11, 128  ;;  %p1843_p2 = scmp.lt.s32.totalorder %s2212_s11, %s2212_s11 }
  0x2c   : > { %p1836_p9 = scmp.ne.s32.totalorder %s2212_s11, %s1835_s10  ;;  %p1844_p6 = scmp.lt.s32.totalorder %s1835_s10, %s1835_s10 }
  0x2e   : > { %p1838_p10 = pnand %p1836_p9, %p2235_p13  ;;  %p1845_p12 = por %p1844_p6, %p1843_p2 }
  0x30   : > { %p1839_p1 = pneg %p1838_p10 }
  0x32   : > { %p1846_p0 = pnand %p1845_p12, %p1839_p1 }
  0x34   : > { %1849 = shalt.err (!%p1846_p0)
}
  0x35   : > { %s2113_s13 = smov 64   ;;  %s2114_s15 = smov 4  }
  0x36   : > { %1718 = dma.hbm_to_vmem [thread:$0]  (!%p2219_p11), %s2664_s2, 128, %s2212_s11, [#allocation7], %s2113_s13, %s2113_s13, %s2114_s15  }
  0x37   : > { %s2666_s3 = sld [smem:[#allocation27_spill]] }
  0x3d   : > { %s1850_s21 = scalar_lea.hbm %s2666_s3, 192 }
  0x3e   : > { %p1851_p1 = scmp.ne.s32.totalorder %s2666_s3, %s1850_s21  ;;  %p1857_p10 = scmp.lt.u32.totalorder %s1850_s21, %s2666_s3 }
  0x40   : > { %p1853_p2 = pnand %p1851_p1, %p2235_p13 }
  0x42   : > { %p1854_p6 = pneg %p1853_p2 }
  0x44   : > { %p1859_p3 = pnand %p1857_p10, %p1854_p6 }
  0x46   : > { %1862 = shalt.err (!%p1859_p3)
}
  0x47   : > { %s1863_s11 = scalar_lea.vmem %s2223_s14, 192  ;;  %p1871_p12 = scmp.lt.s32.totalorder %s2223_s14, %s2223_s14 }
  0x48   : > { %p1864_p5 = scmp.ne.s32.totalorder %s2223_s14, %s1863_s11  ;;  %p1872_p0 = scmp.lt.s32.totalorder %s1863_s11, %s1863_s11 }
  0x4a   : > { %p1866_p7 = pnand %p1864_p5, %p2235_p13  ;;  %p1873_p1 = por %p1872_p0, %p1871_p12 }
  0x4c   : > { %p1867_p9 = pneg %p1866_p7 }
  0x4e   : > { %p1874_p2 = pnand %p1873_p1, %p1867_p9 }
  0x50   : > { %1877 = shalt.err (!%p1874_p2)
}
  0x51   : > { %1721 = dma.hbm_to_vmem [thread:$0]  (!%p2219_p11), %s2666_s3, 192, %s2223_s14, [#allocation10], %s2113_s13, %s2113_s13, %s2114_s15  }
  0x52   : > { %s2667_s4 = sld [smem:[#allocation28_spill]] }
  0x58   : > { %s1878_s20 = scalar_lea.hbm %s2667_s4, 2304 }
  0x59   : > { %p1879_p6 = scmp.ne.s32.totalorder %s2667_s4, %s1878_s20  ;;  %p1885_p5 = scmp.lt.u32.totalorder %s1878_s20, %s2667_s4 }
  0x5b   : > { %p1881_p10 = pnand %p1879_p6, %p2235_p13 }
  0x5d   : > { %p1882_p3 = pneg %p1881_p10 }
  0x5f   : > { %p1887_p7 = pnand %p1885_p5, %p1882_p3 }
  0x61   : > { %1890 = shalt.err (!%p1887_p7)
}
  0x62   : > { %s1891_s11 = scalar_lea.vmem %s264_s16, 2304  ;;  %p1899_p1 = scmp.lt.s32.totalorder %s264_s16, %s264_s16 }
  0x63   : > { %p1892_p9 = scmp.ne.s32.totalorder %s264_s16, %s1891_s11  ;;  %p1900_p2 = scmp.lt.s32.totalorder %s1891_s11, %s1891_s11 }
  0x65   : > { %p1894_p12 = pnand %p1892_p9, %p2235_p13  ;;  %p1901_p4 = por %p1900_p2, %p1899_p1 }
  0x67   : > { %p1895_p0 = pneg %p1894_p12 }
  0x69   : > { %p1902_p8 = pnand %p1901_p4, %p1895_p0 }
  0x6b   : > { %1905 = shalt.err (!%p1902_p8)
}
  0x6c   : > { %1724 = dma.hbm_to_vmem [thread:$0]  (!%p2219_p11), %s2667_s4, 2304, %s264_s16, [#allocation10], %s2113_s13, %s2113_s13, %s2114_s15  }
  0x6d   : > { %s2115_s17 = smov [#allocation12]   ;;  %s1906_s21 = scalar_lea.hbm %s2644_s5, 2048 }
  0x6e   : > { %s276_s18 = sshll.u32 %s2115_s17, 4  ;;  %p1907_p4 = scmp.ne.s32.totalorder %s2644_s5, %s1906_s21  ;;  %s277_s18 = int_to_ptr.vmem [resolvable:$true] %s276_s18 }
  0x6f   : > { %p1913_p10 = scmp.lt.u32.totalorder %s1906_s21, %s2644_s5 }
  0x70   : > { %p1909_p8 = pnand %p1907_p4, %p2235_p13 }
  0x72   : > { %p1910_p6 = pneg %p1909_p8 }
  0x74   : > { %p1915_p3 = pnand %p1913_p10, %p1910_p6 }
  0x76   : > { %1918 = shalt.err (!%p1915_p3)
}
  0x77   : > { %s1919_s16 = scalar_lea.vmem %s277_s18, 2048  ;;  %p1927_p12 = scmp.lt.s32.totalorder %s277_s18, %s277_s18 }
  0x78   : > { %p1920_p5 = scmp.ne.s32.totalorder %s277_s18, %s1919_s16  ;;  %p1928_p0 = scmp.lt.s32.totalorder %s1919_s16, %s1919_s16 }
  0x7a   : > { %p1922_p7 = pnand %p1920_p5, %p2235_p13  ;;  %p1929_p1 = por %p1928_p0, %p1927_p12 }
  0x7c   : > { %p1923_p9 = pneg %p1922_p7 }
  0x7e   : > { %p1930_p2 = pnand %p1929_p1, %p1923_p9 }
  0x80   : > { %1933 = shalt.err (!%p1930_p2)
}
  0x81   : > { %s2651_s13 = smov 128   ;;  %s2653_s22 = smov 8  }
  0x82   : > { %1727 = dma.hbm_to_vmem [thread:$0]  (!%p2219_p11), %s2644_s5, 2048, %s277_s18, [#allocation13], %s2651_s13, %s2651_s13, %s2653_s22  }
  0x83   : > { %s2329_s8 = sadd.s32 1, %s2108_s27   ;;  %s39_s19 = sadd.s32 1, %s2104_s26 }
  0x84   : > { %s36_s17 = ssub.s32 %s2108_s27, %s2329_s8  ;;  %p46_p4 = scmp.ne.s32.totalorder %s2104_s26, %s2100_s25 }
  0x85   : > { %p37_p13 = scmp.eq.s32.totalorder %s36_s17, 0  ;;  %p47_p8 = scmp.eq.s32.totalorder %s2108_s27, 0 }
  0x86   : > { %p2668_p10 = scmp.eq.s32.totalorder %s2189_s28, 1  ;;  %p1746_p5 = scmp.lt.s32.totalorder %s2108_s27, 2 }
  0x87   : > { %s2338_s20 = scalar_select %p37_p13, %s2104_s26, %s39_s19  }
  0x88   : > { %p48_p6 = por %p47_p8, %p46_p4  ;;  %p2342_p3 = por %p2668_p10, %p46_p4 }
  0x89   : > { %s2348_s21 = sand.u32 1, %s2104_s26   ;;  %s1458_s23 = sshll.u32 %s2108_s27, 9 }
  0x8a   : > { %s1391_s18 = sshll.u32 %s2348_s21, 5  ;;  %s2670_s0 = sld [smem:[#allocation25_spill]] }
  0x8b   : > { %s294_s16 = scalar_lea.vmem [#allocation3], %s1391_s18  ;;  %p2359_p11 = pnand %p1746_p5, %p48_p6 }
  0x8c   : > { %s302_s15 = sshll.u32 %s294_s16, 4  ;;  %s1395_s19 = sshll.u32 %s2348_s21, 4  ;;  %s2357_s15 = int_to_ptr.vmem [resolvable:$true] %s302_s15 }
  0x8d   : > { %s291_s13 = scalar_lea.sflag [#allocation4], %s2348_s21  ;;  %p1936_p9 = pneg %p2359_p11 }
  0x90   : > { %s2355_s11 = scalar_lea.hbm %s2670_s0, %s1458_s23  ;;  %s1939_s10 = scalar_lea.hbm %s2670_s0, 1024 }
  0x91   : > { %s1934_s29 = scalar_lea.hbm %s2355_s11, 512  ;;  %p1940_p1 = scmp.lt.u32.totalorder %s2355_s11, %s2670_s0 }
  0x92   : > { %p1935_p7 = scmp.ne.s32.totalorder %s2355_s11, %s1934_s29  ;;  %p1941_p2 = scmp.lt.u32.totalorder %s1939_s10, %s1934_s29 }
  0x93   : > { %p1943_p4 = scmp.lt.u32.totalorder %s1934_s29, %s2355_s11 }
  0x94   : > { %p1937_p12 = pnand %p1936_p9, %p1935_p7  ;;  %p1942_p13 = por %p1941_p2, %p1940_p1 }
  0x96   : > { %p1938_p0 = pneg %p1937_p12  ;;  %p1944_p8 = por %p1943_p4, %p1942_p13 }
  0x98   : > { %p1945_p6 = pnand %p1944_p8, %p1938_p0 }
  0x9a   : > { %1948 = shalt.err (!%p1945_p6)
}
  0x9b   : > { %s1949_s17 = scalar_lea.vmem %s2357_s15, 512  ;;  %s2118_s18 = smov [#allocation3]  }
  0x9c   : > { %p1950_p10 = scmp.ne.s32.totalorder %s2357_s15, %s1949_s17  ;;  %s1954_s23 = sshll.u32 %s2118_s18, 4  ;;  %s1955_s23 = int_to_ptr.vmem [resolvable:$false] %s1954_s23 }
  0x9d   : > { %s1956_s22 = scalar_lea.vmem %s1955_s23, 1024  ;;  %p1957_p12 = scmp.lt.s32.totalorder %s2357_s15, %s1955_s23 }
  0x9e   : > { %p1952_p5 = pnand %p1950_p10, %p1936_p9  ;;  %p1958_p1 = scmp.lt.s32.totalorder %s1956_s22, %s1949_s17 }
  0xa0   : > { %p1953_p7 = pneg %p1952_p5  ;;  %p1959_p2 = por %p1958_p1, %p1957_p12 }
  0xa2   : > { %p1960_p13 = pnand %p1959_p2, %p1953_p7 }
  0xa4   : > { %1963 = shalt.err (!%p1960_p13)
}
  0xa5   : > { %s2672_s29 = smov 8   ;;  %s2673_s10 = smov 128  }
  0xa6   : > { %1731 = dma.hbm_to_vmem [thread:$0]  (!%p2359_p11), %s2355_s11, 512, %s2357_s15, %s291_s13, %s2673_s10, %s2673_s10, %s2672_s29  }
  0xa7   : > { %s1459_s16 = sshll.u32 %s2108_s27, 8  ;;  %s316_s22 = scalar_lea.vmem [#allocation6], %s1395_s19 }
  0xa8   : > { %s2400_s23 = scalar_lea.hbm %s2640_s1, %s1459_s16  ;;  %s323_s0 = sshll.u32 %s316_s22, 4  ;;  %s2404_s0 = int_to_ptr.vmem [resolvable:$true] %s323_s0 }
  0xa9   : > { %s2674_s2 = sand.u32 1, %s2108_s27   ;;  %s1964_s4 = scalar_lea.hbm %s2400_s23, 256 }
  0xaa   : > { %s2408_s3 = scalar_lea.sflag [#allocation7], %s2674_s2  ;;  %p1965_p0 = scmp.ne.s32.totalorder %s2400_s23, %s1964_s4 }
  0xab   : > { %s1969_s21 = scalar_lea.hbm %s2640_s1, 512  ;;  %p1970_p6 = scmp.lt.u32.totalorder %s2400_s23, %s2640_s1 }
  0xac   : > { %p1967_p4 = pnand %p1965_p0, %p1936_p9  ;;  %p1971_p10 = scmp.lt.u32.totalorder %s1969_s21, %s1964_s4 }
  0xad   : > { %p1973_p7 = scmp.lt.u32.totalorder %s1964_s4, %s2400_s23 }
  0xae   : > { %p1968_p8 = pneg %p1967_p4  ;;  %p1972_p5 = por %p1971_p10, %p1970_p6 }
  0xb0   : > { %p1974_p12 = por %p1973_p7, %p1972_p5 }
  0xb2   : > { %p1975_p1 = pnand %p1974_p12, %p1968_p8 }
  0xb4   : > { %1978 = shalt.err (!%p1975_p1)
}
  0xb5   : > { %s1979_s2 = scalar_lea.vmem %s2404_s0, 256  ;;  %s2119_s19 = smov [#allocation6]  }
  0xb6   : > { %p1980_p2 = scmp.ne.s32.totalorder %s2404_s0, %s1979_s2  ;;  %s1984_s18 = sshll.u32 %s2119_s19, 4  ;;  %s1985_s18 = int_to_ptr.vmem [resolvable:$false] %s1984_s18 }
  0xb7   : > { %s1986_s17 = scalar_lea.vmem %s1985_s18, 512  ;;  %p1987_p4 = scmp.lt.s32.totalorder %s2404_s0, %s1985_s18 }
  0xb8   : > { %p1982_p13 = pnand %p1980_p2, %p1936_p9  ;;  %p1988_p6 = scmp.lt.s32.totalorder %s1986_s17, %s1979_s2 }
  0xba   : > { %p1983_p0 = pneg %p1982_p13  ;;  %p1989_p10 = por %p1988_p6, %p1987_p4 }
  0xbc   : > { %p1990_p5 = pnand %p1989_p10, %p1983_p0 }
  0xbe   : > { %1993 = shalt.err (!%p1990_p5)
}
  0xbf   : > { %1734 = dma.hbm_to_vmem [thread:$0]  (!%p2359_p11), %s2400_s23, 256, %s2404_s0, %s2408_s3, %s2673_s10, %s2673_s10, %s2672_s29  }
  0xc0   : > { %p2675_p9 = scmp.ne.s32.totalorder %s2662_s9, 0 }
  0xc1   : > { %s2440_s4 = sand.u32 (!%p2675_p9), 1, %s2100_s25   ;;  %p2676_p8 = scmp.ne.s32.totalorder (!%p2675_p9), %s2659_s30, 0 }
  0xc2   : > { %335 = sbr.rel (%p2675_p9) target bundleno = 1279 (0x4ff), region = 44  ;;  %s1399_s22 = sshll.u32 (!%p2675_p9), %s2440_s4, 5 }
  0xc3   : > { %s338_s13 = scalar_lea.sflag (!%p2675_p9), [#allocation4], %s2440_s4  ;;  %s2446_s14 = scalar_lea.vmem (!%p2675_p9), [#allocation3], %s1399_s22 }
  0xc9   : > { %2067 = dma.done.wait (%p2676_p8), %s338_s13, 512  }
  0xca   : > { %2069 = vsyncadd (%p2676_p8), %s338_s13, 4294966784  ;;  %s346_s0 = sand.u32 1, %s2189_s28   ;;  %s1400_s3 = sshll.u32 %s2440_s4, 4 }
  0xcb   : > { %s347_s9 = scalar_lea.sflag [#allocation7], %s346_s0  ;;  %s350_s29 = scalar_lea.vmem [#allocation6], %s1400_s3 }
  0xcc   : > { %2071 = dma.done.wait (%p2676_p8), %s347_s9, 256  }
  0xcd   : > { %2073 = vsyncadd (%p2676_p8), %s347_s9, 4294967040  ;;  %p2677_p11 = scmp.eq.s32.totalorder %s2189_s28, 0 }
  0xcf   : > { %2075 = dma.done.wait (%p2677_p11), [#allocation7], 128   ;;  %p2678_p7 = pmov %p2677_p11 }
  0xd1   : > { %2077 = vsyncadd (%p2678_p7), [#allocation7], 4294967168  ;;  %p2679_p12 = pmov %p2678_p7 }
  0xd2   : > { %p2680_p1 = pmov %p2678_p7 }
  0xd3   : > { %2079 = dma.done.wait (%p2679_p12), [#allocation10], 2496  }
  0xd4   : > { %2081 = vsyncadd (%p2680_p1), [#allocation10], 4294964800  ;;  %p2681_p2 = pmov %p2680_p1 }
  0xd5   : > { %p2682_p13 = pmov %p2680_p1 }
  0xd6   : > { %2083 = dma.done.wait (%p2681_p2), [#allocation13], 2048  }
  0xd7   : > { %2085 = vsyncadd (%p2682_p13), [#allocation13], 4294965248  ;;  %v2120_v0 = vmov 0.0   ;;  %vm2121_vm0 = vmmov 0   ;;  %v422_v1 = vld [vmem:[%s350_s29] sm:$0xff]  ;;  %vm433_vm1 = vcmask 1043456  }
  0xd8   : > { %1516 = vmatprep.subr.bf16.mxu1 %v2120_v0  ;;  %1518 = vmatprep.mubr.msk.bf16.mxu1 %vm2121_vm0, %v2120_v0  ;;  %v423_v2 = vpack.c.bf16 %v422_v1, %v422_v1  ;;  %v1414_v3 = vld [vmem:[%s350_s29 + $0x8] sm:$0xff]  ;;  %v1798_v4 = vld [vmem:[#allocation8] sm:$0xff]   ;;  %vm429_vm2 = vcmask 64512   ;;  %v1801_v10 = vld [vmem:[#allocation9 + $0x8] ss:$0 sps:$4 sm:$0xff]   ;;  %vm491_vm3 = vcmask 195584  }
  0xd9   : > { %1530 = vmatprep.subr.bf16.mxu0 %v2120_v0  ;;  %1532 = vmatprep.mubr.msk.bf16.mxu0 %vm2121_vm0, %v2120_v0  ;;  %v561_v5 = vpack.c.bf16 %v1414_v3, %v1414_v3  ;;  %v1799_v7 = vld [vmem:[#allocation8] sm:$0xff]   ;;  %v1800_v9 = vld [vmem:[#allocation9] sm:$0xff]   ;;  %v496_v11 = vsel %vm433_vm1, %v1801_v10, 0  ;;  %v1803_v21 = vld [vmem:[#allocation9 + $0x8] ss:$0 sps:$4 sm:$0xff]   ;;  %vm417_vm4 = vcmask 392192  }
  0xda   : > { %v435_v6 = vsel %vm433_vm1, %v423_v2, 0  ;;  %v1802_v16 = vld [vmem:[#allocation9] sm:$0xff]   ;;  %v631_v24 = vsel %vm433_vm1, %v1803_v21, 0  ;;  %v1804_v25 = vld [vmem:[#allocation11] sm:$0xff]   ;;  %v1806_v27 = vld [vmem:[#allocation11 + $0x8] sm:$0xff]   ;;  %vm411_vm5 = vcmask 778240  }
  0xdb   : > { %1517 = vmatpush3.bf16.msra.mxu1 %v435_v6  ;;  %v571_v8 = vsel %vm433_vm1, %v561_v5, 0  ;;  %v1805_v26 = vld [vmem:[#allocation11 + $0x30] sm:$0xff]   ;;  %v1807_v28 = vld [vmem:[#allocation11 + $0x38] sm:$0xff]   ;;  %v1809_v30 = vld [vmem:[#allocation11 + $0x40] sm:$0xff]   ;;  %412 = vst.msk [vmem:[#allocation2] sm:$0x1] %vm411_vm5, %v2120_v0 }
  0xdc   : > { %1531 = vmatpush3.bf16.msra.mxu0 %v571_v8  ;;  %1522 = vmatprep.subr.bf16.mxu1 %v2120_v0  ;;  %v1808_v29 = vld [vmem:[#allocation11 + $0x10] sm:$0xff]   ;;  %v1810_v32 = vld [vmem:[#allocation11 + $0x18] sm:$0xff]   ;;  %v1811_v33 = vld [vmem:[#allocation11 + $0x48] sm:$0xff]   ;;  %550 = vst.msk [vmem:[#allocation2 + $0x18] sm:$0x1] %vm411_vm5, %v2120_v0  ;;  %vm413_vm6 = vcmask 784384  }
  0xdd   : > { %1568 = vmatprep.subr.bf16.mxu0 %v2120_v0  ;;  %v415_v31 = vld [vmem:[%s2446_s14] sm:$0xff]  ;;  %v416_v34 = vld [vmem:[%s2446_s14 + $0x8] sm:$0xff]  ;;  %v1812_v35 = vld [vmem:[#allocation11 + $0x20] sm:$0xff]   ;;  %414 = vst.msk [vmem:[#allocation2 + $0x11] sm:$0x7f] %vm413_vm6, %v2120_v0  ;;  %s2122_s30 = smov 48  }
  0xde   : > { %1519 = vmatmul.mubr.msk.bf16.vlgmr.msra.gmra.mrb[0].mxu1 %vm429_vm2, %v1798_v4  ;;  %418 = vst.msk [vmem:[#allocation2 + $0x1] sm:$0xff] %vm417_vm4, %v415_v31  ;;  %419 = vst.msk [vmem:[#allocation2 + $0x9] sm:$0xff] %vm417_vm4, %v416_v34  ;;  %v1813_v36 = vld [vmem:[#allocation11 + $0x50] sm:$0xff]   ;;  %v1412_v37 = vld [vmem:[%s2446_s14 + $0x10] sm:$0xff]  ;;  %vm547_vm7 = vcmask 785792   ;;  %vm763_vm8 = vcmask 785408  }
  0xdf   : > { %1533 = vmatmul.mubr.msk.bf16.vlgmr.msra.gmra.mrb[0].mxu0 %vm429_vm2, %v1799_v7  ;;  %1523 = vmatpush3.bf16.msra.mxu1 %v1800_v9  ;;  %551 = vst.msk [vmem:[#allocation2 + $0x29] sm:$0x7f] %vm413_vm6, %v2120_v0  ;;  %v1814_v38 = vld [vmem:[#allocation11 + $0x28] sm:$0xff]   ;;  %v1815_v39 = vld [vmem:[#allocation11 + $0x58] sm:$0xff]   ;;  %v1816_v53 = vld [vmem:[#allocation11 + $0x60] sm:$0xff]   ;;  %s2551_s10 = scalar_lea.vmem [#allocation14], %s1399_s22 }
  0xe0   : > { %1524 = vmatprep.subr.bf16.mxu1 %v2120_v0  ;;  %1526 = vmatprep.mubr.msk.bf16.mxu1 %vm2121_vm0, %v2120_v0  ;;  %555 = vst.msk [vmem:[#allocation2 + $0x19] sm:$0xff] %vm417_vm4, %v1412_v37  ;;  %v1413_v40 = vld [vmem:[%s2446_s14 + $0x18] sm:$0xff]  ;;  %v1818_v2 = vld [vmem:[#allocation11 + $0x70] sm:$0xff]   ;;  %v1819_v5 = vld [vmem:[#allocation11 + $0x78] sm:$0xff]   ;;  %vm1095_vm9 = vcmask 1040384   ;;  %s1205_s23 = sshll.u32 %s2551_s10, 4  ;;  %s2558_s23 = int_to_ptr.vmem [resolvable:$true] %s1205_s23 }
  0xe1   : > { %1580 = vmatprep.mubr.msk.bf16.mxu0 %vm2121_vm0, %v2120_v0  ;;  %1569 = vmatpush3.bf16.msra.mxu0 %v1804_v25  ;;  %556 = vst.msk [vmem:[#allocation2 + $0x21] sm:$0xff] %vm417_vm4, %v1413_v40  ;;  %v1817_v60 = vld [vmem:[#allocation11 + $0x68] sm:$0xff]   ;;  %v1820_v10 = vld [vmem:[#allocation11 + $0x80] sm:$0xff]   ;;  %v1102_v31 = vld [vmem:[#allocation12 + $0x28] sm:$0xff]  ;;  %s1461_s11 = sshll.u32 %s2189_s28, 9  ;;  %s1186_s2 = scalar_lea.sflag [#allocation5], %s2440_s4 }
  0xe2   : > { %1570 = vmatprep.subr.bf16.mxu0 %v2120_v0  ;;  %s2564_s16 = scalar_lea.hbm %s2645_s6, %s1461_s11  ;;  %s1994_s19 = scalar_lea.vmem %s2558_s23, 512 }
  0xe3   : > { %1525 = vmatpush3.bf16.msra.mxu1 %v496_v11  ;;  %p1995_p0 = scmp.ne.s32.totalorder %s2558_s23, %s1994_s19  ;;  %s2124_s18 = smov [#allocation14]  }
  0xe4   : > { %1536 = vmatprep.subr.bf16.mxu1 %v2120_v0  ;;  %v707_v61 = vld [vmem:[#allocation2 + $0x11] sm:$0xff]  ;;  %s1998_s17 = sshll.u32 %s2124_s18, 4  ;;  %s1999_s17 = int_to_ptr.vmem [resolvable:$false] %s1998_s17 }
  0xe5   : > { %1571 = vmatpush3.bf16.msra.mxu0 %v1806_v27  ;;  %v1099_v27 = vld [vmem:[#allocation12 + $0x10] sm:$0xff]  ;;  %p1996_p4 = pnand %p1995_p0, %p2342_p3  ;;  %s2000_s22 = scalar_lea.vmem %s1999_s17, 1024 }
  0xe6   : > { %1572 = vmatprep.subr.bf16.mxu0 %v2120_v0  ;;  %v710_v6 = vld [vmem:[#allocation2 + $0x29] sm:$0x3f]  ;;  %p2001_p10 = scmp.lt.s32.totalorder %s2558_s23, %s1999_s17  ;;  %p2002_p5 = scmp.lt.s32.totalorder %s2000_s22, %s1994_s19 }
  0xe7   : > { %v933_v21 = vld [vmem:[#allocation2 + $0x2a] sm:$0x3f]  ;;  %p1997_p6 = pneg %p1996_p4 }
  0xe8   : > { %p2003_p9 = por %p2002_p5, %p2001_p10 }
  0xe9   : > { %1573 = vmatpush3.bf16.msra.mxu0 %v1808_v29 }
  0xea   : > { %1574 = vmatprep.subr.bf16.mxu0 %v2120_v0  ;;  %p2004_p8 = pnand %p2003_p9, %p1997_p6 }
  0xed   : > { %1575 = vmatpush3.bf16.msra.mxu0 %v1810_v32  ;;  %v1103_v32 = vld [vmem:[#allocation12 + $0x30] sm:$0xff] }
  0xee   : > { %1576 = vmatprep.subr.bf16.mxu0 %v2120_v0 }
  0xf1   : > { %1577 = vmatpush3.bf16.msra.mxu0 %v1812_v35  ;;  %v1105_v35 = vld [vmem:[#allocation12 + $0x40] sm:$0xff] }
  0xf2   : > { %1578 = vmatprep.subr.bf16.mxu0 %v2120_v0 }
  0xf5   : > { %1579 = vmatpush3.bf16.msra.mxu0 %v1814_v38  ;;  %v1107_v38 = vld [vmem:[#allocation12 + $0x50] sm:$0xff] }
  0xf6   : > { %1592 = vmatprep.subr.bf16.mxu0 %v2120_v0 }
 0x1b1   : > { %v471_v12 = vpop.f32.mrb[0].mxu1 }
 0x1b2   : > { %v1520_v13 = vpop.f32.mrb[1].mxu1  ;;  %v607_v14 = vpop.f32.mrb[0].mxu0 }
 0x1b3   : > { %v474_v15 = vpop.f32.mrb[2].mxu1  ;;  %v1534_v17 = vpop.f32.mrb[1].mxu0  ;;  %v1821_v13 = vld [vmem:[#allocation11 + $0x88] sm:$0xff]  }
 0x1b4   : > { %v478_v18 = vpack.c.bf16 %v474_v15, %v471_v12  ;;  %v1521_v19 = vpop.f32.mrb[3].mxu1  ;;  %v610_v20 = vpop.f32.mrb[2].mxu0 }
 0x1b5   : > { %v614_v22 = vpack.c.bf16 %v610_v20, %v607_v14  ;;  %v1535_v23 = vpop.f32.mrb[3].mxu0 }
 0x1b6   : > { %1527 = vmatmul.mubr.msk.bf16.vlgmr.msra.gmra.mrb[4].mxu1 %vm491_vm3, %v478_v18  ;;  %v1097_v23 = vld [vmem:[#allocation12] sm:$0xff] }
 0x1b7   : > { %1537 = vmatpush3.bf16.msra.mxu1 %v1802_v16  ;;  %1540 = vmatprep.mubr.msk.bf16.mxu1 %vm2121_vm0, %v2120_v0 }
 0x1b8   : > { %1538 = vmatprep.subr.bf16.mxu1 %v2120_v0 }
 0x1bb   : > { %1539 = vmatpush3.bf16.msra.mxu1 %v631_v24  ;;  %v1098_v24 = vld [vmem:[#allocation12 + $0x8] sm:$0xff] }
 0x1bc   : > { %1544 = vmatprep.subr.bf16.mxu1 %v2120_v0  ;;  %v1652_v25 = vpack.c.bf16 %v1098_v24, %v1097_v23 }
 0x1be   : > { %1541 = vmatmul.mubr.msk.bf16.vlgmr.msra.gmra.mrb[8].mxu1 %vm491_vm3, %v614_v22 }
 0x1bf   : > { %1556 = vmatprep.mubr.msk.bf16.mxu1 %vm2121_vm0, %v2120_v0  ;;  %1545 = vmatpush3.bf16.msra.mxu1 %v1805_v26  ;;  %v2123_v26 = vmov 0.0|0.0  }
 0x1c0   : > { %1546 = vmatprep.subr.bf16.mxu1 %v2120_v0 }
 0x1c3   : > { %1547 = vmatpush3.bf16.msra.mxu1 %v1807_v28  ;;  %v1100_v28 = vld [vmem:[#allocation12 + $0x18] sm:$0xff] }
 0x1c4   : > { %1548 = vmatprep.subr.bf16.mxu1 %v2120_v0  ;;  %v1655_v29 = vpack.c.bf16 %v1100_v28, %v1099_v27 }
 0x1c7   : > { %1549 = vmatpush3.bf16.msra.mxu1 %v1809_v30  ;;  %v1101_v30 = vld [vmem:[#allocation12 + $0x20] sm:$0xff] }
 0x1c8   : > { %1550 = vmatprep.subr.bf16.mxu1 %v2120_v0 }
 0x1cb   : > { %1551 = vmatpush3.bf16.msra.mxu1 %v1811_v33  ;;  %v1104_v33 = vld [vmem:[#allocation12 + $0x38] sm:$0xff] }
 0x1cc   : > { %1552 = vmatprep.subr.bf16.mxu1 %v2120_v0  ;;  %v1661_v34 = vpack.c.bf16 %v1104_v33, %v1103_v32 }
 0x1cf   : > { %1553 = vmatpush3.bf16.msra.mxu1 %v1813_v36  ;;  %v1106_v36 = vld [vmem:[#allocation12 + $0x48] sm:$0xff] }
 0x1d0   : > { %1554 = vmatprep.subr.bf16.mxu1 %v2120_v0  ;;  %v1664_v37 = vpack.c.bf16 %v1106_v36, %v1105_v35 }
 0x1d3   : > { %1555 = vmatpush3.bf16.msra.mxu1 %v1815_v39  ;;  %v1108_v39 = vld [vmem:[#allocation12 + $0x58] sm:$0xff] }
 0x1d4   : > { %1651 = vmatprep.subr.bf16.mxu1 %v2123_v26  ;;  %v1667_v40 = vpack.c.bf16 %v1108_v39, %v1107_v38 }
 0x289   : > { %v532_v41 = vpop.f32.mrb[4].mxu1 }
 0x28a   : > { %541 = vrot.lane.b32.xlu0 %v532_v41, %s2122_s30  ;;  %v1528_v42 = vpop.f32.mrb[5].mxu1  ;;  %v1109_v41 = vld [vmem:[#allocation12 + $0x60] sm:$0xff] }
 0x28b   : > { %v535_v43 = vpop.f32.mrb[6].mxu1  ;;  %v1110_v42 = vld [vmem:[#allocation12 + $0x68] sm:$0xff] }
 0x28c   : > { %v1529_v44 = vpop.f32.mrb[7].mxu1 }
 0x28d   : > { %v1111_v44 = vld [vmem:[#allocation12 + $0x70] sm:$0xff] }
 0x28e   : > { %543 = vrot.lane.b32.xlu0 %v535_v43, %s2122_s30  ;;  %v1670_v43 = vpack.c.bf16 %v1110_v42, %v1109_v41 }
 0x291   : > { %v667_v45 = vpop.f32.mrb[8].mxu1 }
 0x292   : > { %676 = vrot.lane.b32.xlu1 %v667_v45, %s2122_s30  ;;  %v1542_v46 = vpop.f32.mrb[9].mxu1  ;;  %v1112_v45 = vld [vmem:[#allocation12 + $0x78] sm:$0xff] }
 0x293   : > { %v670_v47 = vpop.f32.mrb[10].mxu1  ;;  %v1673_v46 = vpack.c.bf16 %v1112_v45, %v1111_v44 }
 0x294   : > { %v1543_v48 = vpop.f32.mrb[11].mxu1 }
 0x296   : > { %678 = vrot.lane.b32.xlu1 %v670_v47, %s2122_s30 }
 0x2fc   : > { %v542_v49 = vpop.permute.xlu0 %541 }
 0x2fd   : > { %548 = vst.msk [vmem:[#allocation2 + $0x1] sm:$0xff] %vm547_vm7, %v542_v49 }
 0x300   : > { %v544_v50 = vpop.permute.xlu0 %543 }
 0x301   : > { %549 = vst.msk [vmem:[#allocation2 + $0x9] sm:$0xff] %vm547_vm7, %v544_v50 }
 0x304   : > { %v677_v51 = vpop.permute.xlu1 %676  ;;  %v705_v52 = vld [vmem:[#allocation2 + $0x1] sm:$0xff] }
 0x305   : > { %682 = vst.msk [vmem:[#allocation2 + $0x19] sm:$0xff] %vm547_vm7, %v677_v51  ;;  %v684_v56 = vld [vmem:[#allocation2] sm:$0xff] }
 0x308   : > { %v679_v54 = vpop.permute.xlu1 %678  ;;  %v706_v55 = vld [vmem:[#allocation2 + $0x9] sm:$0xff] }
 0x309   : > { %v685_v57 = vld [vmem:[#allocation2 + $0x8] sm:$0xff]  ;;  %683 = vst.msk [vmem:[#allocation2 + $0x21] sm:$0xff] %vm547_vm7, %v679_v54  ;;  %v711_v58 = vpack.c.bf16 %v706_v55, %v705_v52  ;;  %v686_v1 = vld [vmem:[#allocation2 + $0x10] sm:$0xff] }
 0x30a   : > { %v690_v59 = vpack.c.bf16 %v685_v57, %v684_v56  ;;  %v928_v14 = vld [vmem:[#allocation2 + $0x2] sm:$0xff]  ;;  %v929_v15 = vld [vmem:[#allocation2 + $0xa] sm:$0xff] }
 0x30b   : > { %1557 = vmatmul.mubr.msk.bf16.vlgmr.msra.gmra.mrb[12].mxu1 %vm763_vm8, %v711_v58  ;;  %v934_v16 = vpack.c.bf16 %v929_v15, %v928_v14 }
 0x30c   : > { %1581 = vmatmul.mubr.msk.bf16.vlgmr.msra.gmra.mrb[4].mxu0 %vm763_vm8, %v690_v59  ;;  %1560 = vmatprep.mubr.msk.bf16.mxu1 %vm2121_vm0, %v2120_v0  ;;  %v708_v62 = vld [vmem:[#allocation2 + $0x19] sm:$0xff] }
 0x30d   : > { %1593 = vmatpush3.bf16.msra.mxu0 %v1816_v53  ;;  %1584 = vmatprep.mubr.msk.bf16.mxu0 %vm2121_vm0, %v2120_v0  ;;  %v687_v63 = vld [vmem:[#allocation2 + $0x18] sm:$0xff]  ;;  %v712_v3 = vpack.c.bf16 %v708_v62, %v707_v61 }
 0x30e   : > { %1594 = vmatprep.subr.bf16.mxu0 %v2120_v0  ;;  %v691_v4 = vpack.c.bf16 %v687_v63, %v686_v1  ;;  %v930_v18 = vld [vmem:[#allocation2 + $0x12] sm:$0xff]  ;;  %1653 = vmatpush3.bf16.msra.mxu1 %v1652_v25 }
 0x30f   : > { %1654 = vmatprep.subr.bf16.mxu1 %v2123_v26 }
 0x310   : > { %v709_v7 = vld [vmem:[#allocation2 + $0x21] sm:$0xff] }
 0x311   : > { %1595 = vmatpush3.bf16.msra.mxu0 %v1817_v60  ;;  %v688_v8 = vld [vmem:[#allocation2 + $0x20] sm:$0xff]  ;;  %v689_v9 = vld [vmem:[#allocation2 + $0x28] sm:$0x3f]  ;;  %v713_v11 = vpack.c.bf16 %v710_v6, %v709_v7 }
 0x312   : > { %1596 = vmatprep.subr.bf16.mxu0 %v2120_v0  ;;  %v692_v12 = vpack.c.bf16 %v689_v9, %v688_v8  ;;  %v931_v17 = vld [vmem:[#allocation2 + $0x1a] sm:$0xff]  ;;  %v932_v20 = vld [vmem:[#allocation2 + $0x22] sm:$0xff]  ;;  %1656 = vmatpush3.bf16.msra.mxu1 %v1655_v29 }
 0x313   : > { %1561 = vmatmul.mubr.msk.bf16.gmra.mrb[16].mxu1 %vm763_vm8, %v712_v3  ;;  %v935_v19 = vpack.c.bf16 %v931_v17, %v930_v18  ;;  %v936_v22 = vpack.c.bf16 %v933_v21, %v932_v20  ;;  %1657 = vmatprep.subr.bf16.mxu1 %v2123_v26 }
 0x314   : > { %1585 = vmatmul.mubr.msk.bf16.gmra.mrb[8].mxu0 %vm763_vm8, %v691_v4  ;;  %1564 = vmatprep.mubr.msk.bf16.mxu1 %vm2121_vm0, %v2120_v0 }
 0x315   : > { %1597 = vmatpush3.bf16.msra.mxu0 %v1818_v2  ;;  %1588 = vmatprep.mubr.msk.bf16.mxu0 %vm2121_vm0, %v2120_v0 }
 0x316   : > { %1598 = vmatprep.subr.bf16.mxu0 %v2120_v0 }
 0x319   : > { %1599 = vmatpush3.bf16.msra.mxu0 %v1819_v5 }
 0x31a   : > { %1600 = vmatprep.subr.bf16.mxu0 %v2120_v0 }
 0x31b   : > { %1565 = vmatmul.mubr.msk.bf16.gmra.mrb[20].mxu1 %vm763_vm8, %v713_v11 }
 0x31c   : > { %1589 = vmatmul.mubr.msk.bf16.gmra.mrb[12].mxu0 %vm763_vm8, %v692_v12  ;;  %1648 = vmatprep.mubr.msk.f32.mxu1 %vm2121_vm0, %v2120_v0 }
 0x31d   : > { %1601 = vmatpush3.bf16.msra.mxu0 %v1820_v10  ;;  %1604 = vmatprep.mubr.msk.bf16.mxu0 %vm2121_vm0, %v2120_v0 }
 0x31e   : > { %1602 = vmatprep.subr.bf16.mxu0 %v2120_v0 }
 0x321   : > { %1603 = vmatpush3.bf16.msra.mxu0 %v1821_v13 }
 0x324   : > { %1605 = vmatmul.mubr.msk.bf16.vlgmr.msra.gmra.mrb[4].mxu0 %vm763_vm8, %v934_v16 }
 0x325   : > { %1608 = vmatprep.mubr.msk.bf16.mxu0 %vm2121_vm0, %v2120_v0 }
 0x32c   : > { %1609 = vmatmul.mubr.msk.bf16.gmra.mrb[8].mxu0 %vm763_vm8, %v935_v19 }
 0x32d   : > { %1612 = vmatprep.mubr.msk.bf16.mxu0 %vm2121_vm0, %v2120_v0  ;;  %v1658_v0 = vpack.c.bf16 %v1102_v31, %v1101_v30 }
 0x32f   : > { %1659 = vmatpush3.bf16.msra.mxu1 %v1658_v0 }
 0x330   : > { %1660 = vmatprep.subr.bf16.mxu1 %v2123_v26 }
 0x333   : > { %1662 = vmatpush3.bf16.msra.mxu1 %v1661_v34 }
 0x334   : > { %1613 = vmatmul.mubr.msk.bf16.gmra.mrb[12].mxu0 %vm763_vm8, %v936_v22  ;;  %1663 = vmatprep.subr.bf16.mxu1 %v2123_v26 }
 0x337   : > { %1665 = vmatpush3.bf16.msra.mxu1 %v1664_v37 }
 0x338   : > { %1666 = vmatprep.subr.bf16.mxu1 %v2123_v26 }
 0x33b   : > { %1668 = vmatpush3.bf16.msra.mxu1 %v1667_v40 }
 0x33c   : > { %1669 = vmatprep.subr.bf16.mxu1 %v2123_v26 }
 0x33f   : > { %1671 = vmatpush3.bf16.msra.mxu1 %v1670_v43 }
 0x340   : > { %1672 = vmatprep.subr.bf16.mxu1 %v2123_v26 }
 0x343   : > { %1674 = vmatpush3.bf16.msra.mxu1 %v1673_v46 }
 0x3de   : > { %v807_v47 = vpop.f32.mrb[12].mxu1 }
 0x3df   : > { %v1558_v48 = vpop.f32.mrb[13].mxu1 }
 0x3e0   : > { %v810_v49 = vpop.f32.mrb[14].mxu1 }
 0x3e1   : > { %v1559_v50 = vpop.f32.mrb[15].mxu1 }
 0x3e6   : > { %v815_v51 = vpop.f32.mrb[16].mxu1 }
 0x3e7   : > { %v1562_v52 = vpop.f32.mrb[17].mxu1 }
 0x3e8   : > { %v817_v53 = vpop.f32.mrb[18].mxu1 }
 0x3e9   : > { %v1563_v54 = vpop.f32.mrb[19].mxu1 }
 0x3ee   : > { %v822_v55 = vpop.f32.mrb[20].mxu1 }
 0x3ef   : > { %v1566_v56 = vpop.f32.mrb[21].mxu1 }
 0x3f0   : > { %v825_v57 = vpop.f32.mrb[22].mxu1 }
 0x3f1   : > { %v1567_v58 = vpop.f32.mrb[23].mxu1 }
 0x3f7   : > { %v1029_v59 = vpop.f32.mrb[4].mxu0 }
 0x3f8   : > { %v1675_v60 = vadd.f32 %v1029_v59, %v807_v47  ;;  %v1606_v61 = vpop.f32.mrb[5].mxu0 }
 0x3f9   : > { %v1032_v62 = vpop.f32.mrb[6].mxu0 }
 0x3fa   : > { %1054 = vst [vmem:[%s2551_s10] sm:$0xff] %v1675_v60  ;;  %v1676_v63 = vadd.f32 %v1032_v62, %v810_v49  ;;  %v1607_v1 = vpop.f32.mrb[7].mxu0  ;;  %v1064_v2 = vmul.f32 %v1675_v60, %v1675_v60 }
 0x3fc   : > { %1055 = vst [vmem:[%s2551_s10 + $0x8] sm:$0xff] %v1676_v63  ;;  %v1056_v3 = vadd.f32 %v1676_v63, %v1675_v60  ;;  %v1065_v4 = vmul.f32 %v1676_v63, %v1676_v63 }
 0x3fe   : > { %v1066_v5 = vadd.f32 %v1065_v4, %v1064_v2  ;;  %v1057_v9 = vrot.slane %v1056_v3, 4 }
 0x3ff   : > { %v1037_v6 = vpop.f32.mrb[8].mxu0 }
 0x400   : > { %v1610_v7 = vpop.f32.mrb[9].mxu0  ;;  %v1067_v12 = vrot.slane %v1066_v5, 4  ;;  %v1058_v13 = vadd.f32 %v1057_v9, %v1056_v3 }
 0x401   : > { %v1039_v8 = vpop.f32.mrb[10].mxu0 }
 0x402   : > { %v1677_v10 = vadd.f32 %v1039_v8, %v817_v53  ;;  %v1611_v11 = vpop.f32.mrb[11].mxu0  ;;  %v1068_v15 = vadd.f32 %v1067_v12, %v1066_v5  ;;  %v1059_v19 = vrot.slane %v1058_v13, 2 }
 0x404   : > { %1447 = vst [vmem:[%s2551_s10 + $0x10] sm:$0xff] %v1677_v10  ;;  %v1085_v20 = vmul.f32 %v1677_v10, %v1677_v10  ;;  %v1069_v24 = vrot.slane %v1068_v15, 2  ;;  %v1060_v27 = vadd.f32 %v1059_v19, %v1058_v13 }
 0x406   : > { %v1070_v30 = vadd.f32 %v1069_v24, %v1068_v15  ;;  %v1061_v32 = vrot.slane %v1060_v27, 1 }
 0x407   : > { %v1044_v14 = vpop.f32.mrb[12].mxu0 }
 0x408   : > { %v1678_v16 = vadd.f32 %v1044_v14, %v822_v55  ;;  %v1614_v17 = vpop.f32.mrb[13].mxu0  ;;  %v1071_v35 = vrot.slane %v1070_v30, 1  ;;  %v1062_v38 = vadd.f32 %v1061_v32, %v1060_v27 }
 0x409   : > { %v1047_v18 = vpop.f32.mrb[14].mxu0 }
 0x40a   : > { %1448 = vst [vmem:[%s2551_s10 + $0x18] sm:$0xff] %v1678_v16  ;;  %v1077_v21 = vadd.f32 %v1678_v16, %v1677_v10  ;;  %v1086_v22 = vmul.f32 %v1678_v16, %v1678_v16  ;;  %v1615_v23 = vpop.f32.mrb[15].mxu0  ;;  %v1072_v41 = vadd.f32 %v1071_v35, %v1070_v30 }
 0x40c   : > { %v1078_v25 = vrot.slane %v1077_v21, 4  ;;  %v1087_v26 = vadd.f32 %v1086_v22, %v1085_v20 }
 0x40e   : > { %v1079_v28 = vadd.f32 %v1078_v25, %v1077_v21  ;;  %v1088_v29 = vrot.slane %v1087_v26, 4 }
 0x410   : > { %v1080_v31 = vrot.slane %v1079_v28, 2  ;;  %v1089_v0 = vadd.f32 %v1088_v29, %v1087_v26 }
 0x412   : > { %v1081_v33 = vadd.f32 %v1080_v31, %v1079_v28  ;;  %v1090_v34 = vrot.slane %v1089_v0, 2 }
 0x414   : > { %v1082_v36 = vrot.slane %v1081_v33, 1  ;;  %v1091_v37 = vadd.f32 %v1090_v34, %v1089_v0 }
 0x416   : > { %v1083_v39 = vadd.f32 %v1082_v36, %v1081_v33  ;;  %v1092_v40 = vrot.slane %v1091_v37, 1 }
 0x418   : > { %v1084_v42 = vadd.f32 %v1083_v39, %v1062_v38  ;;  %v1093_v43 = vadd.f32 %v1092_v40, %v1091_v37 }
 0x41a   : > { %v1094_v44 = vadd.f32 %v1093_v43, %v1072_v41 }
 0x41c   : > { %v1096_v45 = vsel %vm1095_vm9, %v1084_v42, %v1094_v44 }
 0x41d   : > { %1649 = vmatmul.mubr.f32.vlgmr.msra.gmra.mrb[24].mxu1 %v1096_v45 }
 0x41e   : > { %2007 = shalt.err (!%p2004_p8)
}
 0x41f   : > { %s2008_s13 = scalar_lea.hbm %s2564_s16, 512  ;;  %s2012_s3 = scalar_lea.hbm %s2645_s6, 1024 }
 0x420   : > { %p2009_p11 = scmp.ne.s32.totalorder %s2564_s16, %s2008_s13  ;;  %p2013_p1 = scmp.lt.u32.totalorder %s2564_s16, %s2645_s6 }
 0x421   : > { %p2014_p2 = scmp.lt.u32.totalorder %s2012_s3, %s2008_s13  ;;  %p2016_p0 = scmp.lt.u32.totalorder %s2008_s13, %s2564_s16 }
 0x422   : > { %p2010_p7 = pnand %p2009_p11, %p2342_p3 }
 0x423   : > { %p2015_p13 = por %p2014_p2, %p2013_p1 }
 0x424   : > { %p2011_p12 = pneg %p2010_p7 }
 0x425   : > { %p2017_p4 = por %p2016_p0, %p2015_p13 }
 0x427   : > { %p2018_p6 = pnand %p2017_p4, %p2011_p12 }
 0x429   : > { %2021 = shalt.err (!%p2018_p6)
}
 0x42a   : > { %s2125_s30 = smov 128   ;;  %s2126_s10 = smov 8   ;;  %vm1183_vm10 = vcmask 58368  }
 0x42b   : > { %1711 = dma.vmem_to_hbm [thread:$0]  (%p2342_p3), %s2558_s23, 512, %s2564_s16, %s1186_s2, %s2125_s30, %s2125_s30, %s2126_s10  }
 0x42c   : > { %s1406_s11 = sshll.u32 %s2440_s4, 1  ;;  %s1454_s21 = sshll.u32 %s2189_s28, 5 }
 0x42d   : > { %s406_s15 = scalar_lea.vmem [#allocation15], %s1406_s11  ;;  %s2595_s22 = scalar_lea.hbm %s2646_s7, %s1454_s21 }
 0x42e   : > { %s1221_s19 = sshll.u32 %s406_s15, 4  ;;  %s1191_s13 = scalar_lea.sflag [#allocation16], %s2440_s4  ;;  %s2597_s19 = int_to_ptr.vmem [resolvable:$true] %s1221_s19 }
 0x42f   : > { %s2022_s23 = scalar_lea.vmem %s2597_s19, 32  ;;  %s2127_s28 = smov [#allocation15]  }
 0x430   : > { %p2023_p10 = scmp.ne.s32.totalorder %s2597_s19, %s2022_s23  ;;  %s2026_s16 = sshll.u32 %s2127_s28, 4  ;;  %s2027_s16 = int_to_ptr.vmem [resolvable:$false] %s2026_s16 }
 0x431   : > { %s2028_s2 = scalar_lea.vmem %s2027_s16, 64  ;;  %p2029_p8 = scmp.lt.s32.totalorder %s2597_s19, %s2027_s16 }
 0x432   : > { %p2024_p5 = pnand %p2023_p10, %p2342_p3  ;;  %p2030_p11 = scmp.lt.s32.totalorder %s2028_s2, %s2022_s23 }
 0x434   : > { %p2025_p9 = pneg %p2024_p5  ;;  %p2031_p7 = por %p2030_p11, %p2029_p8 }
 0x436   : > { %p2032_p12 = pnand %p2031_p7, %p2025_p9 }
 0x4f0   : > { %v1179_v46 = vpop.f32.mrb[24].mxu1 }
 0x4f1   : > { %1184 = vst.msk [vmem:[%s406_s15] sm:$0x3] %vm1183_vm10, %v1179_v46  ;;  %v1650_v47 = vpop.f32.mrb[25].mxu1 }
 0x4f2   : > { %2035 = shalt.err (!%p2032_p12)
}
 0x4f3   : > { %s2036_s4 = scalar_lea.hbm %s2595_s22, 32  ;;  %s2040_s3 = scalar_lea.hbm %s2646_s7, 64 }
 0x4f4   : > { %p2037_p1 = scmp.ne.s32.totalorder %s2595_s22, %s2036_s4  ;;  %p2041_p0 = scmp.lt.u32.totalorder %s2595_s22, %s2646_s7 }
 0x4f5   : > { %p2042_p4 = scmp.lt.u32.totalorder %s2040_s3, %s2036_s4  ;;  %p2044_p10 = scmp.lt.u32.totalorder %s2036_s4, %s2595_s22 }
 0x4f6   : > { %p2038_p2 = pnand %p2037_p1, %p2342_p3 }
 0x4f7   : > { %p2043_p6 = por %p2042_p4, %p2041_p0 }
 0x4f8   : > { %p2039_p13 = pneg %p2038_p2 }
 0x4f9   : > { %p2045_p5 = por %p2044_p10, %p2043_p6 }
 0x4fb   : > { %p2046_p9 = pnand %p2045_p5, %p2039_p13 }
 0x4fd   : > { %2049 = shalt.err (!%p2046_p9)
}
 0x4fe   : > { %1712 = dma.vmem_to_hbm [thread:$0]  (%p2342_p3), %s2597_s19, 32, %s2595_s22, %s1191_s13  }
 0x4ff PF: > { %s2683_s30 = sld [smem:[#allocation24_spill]]  ;;  %s1233_s10 = sand.u32 1, %s2096_s24  }
 0x500   : > { %p2685_p11 = scmp.ge.s32.totalorder %s2108_s27, 2  ;;  %s1234_s11 = scalar_lea.sflag [#allocation5], %s1233_s10 }
 0x505   : > { %p2684_p8 = scmp.ne.s32.totalorder %s2683_s30, 0 }
 0x507   : > { %p1736_p7 = pnand %p2685_p11, %p2684_p8 }
 0x509   : > { %2087 = dma.done.wait (!%p1736_p7), %s1234_s11, 512  }
 0x50a   : > { %2089 = vsyncadd (!%p1736_p7), %s1234_s11, 4294966784  ;;  %s1243_s21 = scalar_lea.sflag [#allocation16], %s1233_s10 }
 0x50b   : > { %2091 = dma.done.wait (!%p1736_p7), %s1243_s21, 32  }
 0x50c   : > { %2093 = vsyncadd (!%p1736_p7), %s1243_s21, 4294967264  ;;  %p29_p3 = scmp.ge.s32.totalorder %s2329_s8, 4   ;;  %s2686_s24 = smov %s2100_s25 }
 0x50d   : > { %s2687_s25 = smov %s2104_s26  ;;  %s2688_s26 = smov %s2338_s20 }
 0x50e   : > { %s2689_s27 = smov %s2329_s8  ;;  %31 = sbr.rel (!%p29_p3) target bundleno = 16 (0x10), region = 140 }
 0x515   :  { %1248 = vsyncpa [#allocation4], 1 }
 0x516   :  { %1250 = vsyncpa [#allocation4 + $0x1], 1 }
 0x517   :  { %1251 = vsyncpa [#allocation7], 1 }
 0x518   :  { %1253 = vsyncpa [#allocation7 + $0x1], 1 }
 0x519   :  { %1254 = vsyncpa [#allocation10], 1 }
 0x51a   :  { %1255 = vsyncpa [#allocation13], 1 }
 0x51b   :  { %1256 = vsyncpa [#allocation5], 1 }
 0x51c   :  { %1258 = vsyncpa [#allocation5 + $0x1], 1 }
 0x51d   :  { %1259 = vsyncpa [#allocation16], 1 }
 0x51e   :  { %1261 = vsyncpa [#allocation16 + $0x1], 1 }

// kernel: up_forward.3
= control target key start
LH: loop header
LB: loop body
LE: loop exit
PB: predicated region body
PF: predicated region fallthrough
CT: control target
= control target key end

     0   :  { %12 = vsyncpa [#allocation4], 0  ;;  %s2165_s0 = inlined_call_operand.hbm [shape: f32[4,16,128], index: 0, kind: input, shape index: {}]   ;;  %s2166_s1 = inlined_call_operand.hbm [shape: f32[1,128], index: 1, kind: input, shape index: {}]   ;;  %s2167_s2 = inlined_call_operand.hbm [shape: f32[1,128], index: 2, kind: input, shape index: {}]   ;;  %s2168_s3 = inlined_call_operand.hbm [shape: bf16[3,128,128], index: 3, kind: input, shape index: {}]   ;;  %s2169_s4 = inlined_call_operand.hbm [shape: f32[128,8], index: 4, kind: input, shape index: {}]   ;;  %s2170_s5 = inlined_call_operand.hbm [shape: f32[4,16,128], index: 5, kind: output, shape index: {0}]   ;;  %s2171_s6 = inlined_call_operand.hbm [shape: f32[2,2,8], index: 6, kind: output, shape index: {1}]  }
   0x1   :  { %14 = vsyncpa [#allocation4 + $0x1], 0 }
   0x2   :  { %15 = vsyncpa [#allocation7], 0 }
   0x3   :  { %16 = vsyncpa [#allocation10], 0 }
   0x4   :  { %17 = vsyncpa [#allocation5], 0 }
   0x5   :  { %19 = vsyncpa [#allocation5 + $0x1], 0 }
   0x6   :  { %20 = vsyncpa [#allocation14], 0 }
   0x7   :  { %22 = vsyncpa [#allocation14 + $0x1], 0  ;;  %s1787_s21 = smov 0   ;;  %s1789_s22 = smov 0  }
   0x8   :  { %s1791_s23 = smov 0   ;;  %s1793_s24 = smov 0  }
   0x9 LB: > { %s1808_s25 = sadd.s32 4294967295, %s1734_s24   ;;  %s1089_s26 = sadd.s32 4294967294, %s1734_s24   ;;  %s1734_s24 = sphi %s1793_s24, %s2194_s24   ;;  %s1730_s23 = sphi %s1791_s23, %s2193_s23   ;;  %s1726_s22 = sphi %s1789_s22, %s2192_s22   ;;  %s1722_s21 = sphi %s1787_s21, %s2191_s21  }
   0xa   : > { %p48_p0 = scmp.ne.s32.totalorder %s1726_s22, %s1722_s21  ;;  %p2172_p1 = scmp.eq.s32.totalorder %s1808_s25, 0 }
   0xb   : > { %p162_p3 = scmp.eq.s32.totalorder %s1089_s26, 1  ;;  %p1090_p5 = scmp.ge.s32.totalorder %s1734_s24, 1 }
   0xc   : > { %p1817_p4 = por %p2172_p1, %p48_p0  ;;  %p195_p7 = scmp.lt.s32.totalorder %s1734_s24, 3 }
   0xd   : > { %p1822_p6 = por %p162_p3, %p48_p0  ;;  %s1736_s30 = smov [#allocation6]  }
   0xe   : > { %s2175_s27 = scalar_select %p1817_p4, 1, 0 }
   0xf   : > { %s2176_s28 = scalar_select %p1822_p6, 1, 0 }
  0x10   : > { %p1827_p8 = pnand %p1090_p5, %p195_p7  ;;  %s208_s7 = sshll.u32 %s1736_s30, 4  ;;  %s209_s7 = int_to_ptr.vmem [resolvable:$true] %s208_s7 }
  0x11   : > { %s1737_s8 = smov [#allocation9]   ;;  %s1738_s11 = smov [#allocation8]  }
  0x12   : > { %s2177_s29 = scalar_select %p1827_p8, 1, 0 }
  0x13   : > { %p1383_p10 = pneg %p1827_p8  ;;  %s229_s9 = sshll.u32 %s1737_s8, 4  ;;  %s1840_s9 = int_to_ptr.vmem [resolvable:$true] %s229_s9 }
  0x14   : > { %s1842_s12 = sshll.u32 %s1738_s11, 4  ;;  %s1486_s15 = scalar_lea.hbm %s2166_s1, 16  ;;  %s220_s12 = int_to_ptr.vmem [resolvable:$true] %s1842_s12 }
  0x15   : > { %p1836_p11 = pnand %p1383_p10, %p2172_p1  ;;  %p1487_p12 = scmp.ne.s32.totalorder %s2166_s1, %s1486_s15 }
  0x16   : > { %p1493_p5 = scmp.lt.u32.totalorder %s1486_s15, %s2166_s1 }
  0x17   : > { %p1852_p13 = pneg %p1836_p11 }
  0x19   : > { %p1489_p0 = pnand %p1852_p13, %p1487_p12 }
  0x1b   : > { %p1490_p3 = pneg %p1489_p0 }
  0x1d   : > { %p1495_p7 = pnand %p1493_p5, %p1490_p3 }
  0x1f   : > { %1498 = shalt.err (!%p1495_p7)
}
  0x20   : > { %s1499_s26 = scalar_lea.vmem %s209_s7, 16  ;;  %s1506_s30 = scalar_lea.vmem %s209_s7, 32 }
  0x21   : > { %p1500_p10 = scmp.ne.s32.totalorder %s209_s7, %s1499_s26  ;;  %p1507_p2 = scmp.lt.s32.totalorder %s209_s7, %s209_s7 }
  0x22   : > { %p1508_p6 = scmp.lt.s32.totalorder %s1506_s30, %s1499_s26 }
  0x23   : > { %p1502_p9 = pnand %p1500_p10, %p1852_p13 }
  0x24   : > { %p1509_p4 = por %p1508_p6, %p1507_p2 }
  0x25   : > { %p1503_p1 = pneg %p1502_p9 }
  0x27   : > { %p1510_p8 = pnand %p1509_p4, %p1503_p1 }
  0x29   : > { %1513 = shalt.err (!%p1510_p8)
}
  0x2a   : > { %1386 = dma.hbm_to_vmem [thread:$0]  (!%p1836_p11), %s2166_s1, 16, %s209_s7, [#allocation7]  }
  0x2b   : > { %s1514_s15 = scalar_lea.hbm %s2168_s3, 3072 }
  0x2c   : > { %p1515_p9 = scmp.ne.s32.totalorder %s2168_s3, %s1514_s15  ;;  %p1521_p1 = scmp.lt.u32.totalorder %s1514_s15, %s2168_s3 }
  0x2e   : > { %p1517_p12 = pnand %p1515_p9, %p1852_p13 }
  0x30   : > { %p1518_p2 = pneg %p1517_p12 }
  0x32   : > { %p1523_p4 = pnand %p1521_p1, %p1518_p2 }
  0x34   : > { %1526 = shalt.err (!%p1523_p4)
}
  0x35   : > { %s1527_s7 = scalar_lea.vmem %s1840_s9, 3072  ;;  %p1535_p3 = scmp.lt.s32.totalorder %s1840_s9, %s1840_s9 }
  0x36   : > { %p1528_p6 = scmp.ne.s32.totalorder %s1840_s9, %s1527_s7  ;;  %p1536_p5 = scmp.lt.s32.totalorder %s1527_s7, %s1527_s7 }
  0x38   : > { %p1530_p8 = pnand %p1528_p6, %p1852_p13  ;;  %p1537_p7 = por %p1536_p5, %p1535_p3 }
  0x3a   : > { %p1531_p0 = pneg %p1530_p8 }
  0x3c   : > { %p1538_p10 = pnand %p1537_p7, %p1531_p0 }
  0x3e   : > { %1541 = shalt.err (!%p1538_p10)
}
  0x3f   : > { %s1739_s26 = smov 64   ;;  %s1740_s30 = smov 4  }
  0x40   : > { %1392 = dma.hbm_to_vmem [thread:$0]  (!%p1836_p11), %s2168_s3, 3072, %s1840_s9, [#allocation10], %s1739_s26, %s1739_s26, %s1740_s30  }
  0x41   : > { %s1542_s15 = scalar_lea.hbm %s2167_s2, 16 }
  0x42   : > { %p1543_p9 = scmp.ne.s32.totalorder %s2167_s2, %s1542_s15  ;;  %p1549_p1 = scmp.lt.u32.totalorder %s1542_s15, %s2167_s2 }
  0x44   : > { %p1545_p12 = pnand %p1543_p9, %p1852_p13 }
  0x46   : > { %p1546_p2 = pneg %p1545_p12 }
  0x48   : > { %p1551_p4 = pnand %p1549_p1, %p1546_p2 }
  0x4a   : > { %1554 = shalt.err (!%p1551_p4)
}
  0x4b   : > { %s1555_s7 = scalar_lea.vmem %s220_s12, 16  ;;  %s1562_s9 = scalar_lea.vmem %s220_s12, 32 }
  0x4c   : > { %p1556_p6 = scmp.ne.s32.totalorder %s220_s12, %s1555_s7  ;;  %p1563_p3 = scmp.lt.s32.totalorder %s220_s12, %s220_s12 }
  0x4d   : > { %p1564_p5 = scmp.lt.s32.totalorder %s1562_s9, %s1555_s7 }
  0x4e   : > { %p1558_p8 = pnand %p1556_p6, %p1852_p13 }
  0x4f   : > { %p1565_p7 = por %p1564_p5, %p1563_p3 }
  0x50   : > { %p1559_p0 = pneg %p1558_p8 }
  0x52   : > { %p1566_p10 = pnand %p1565_p7, %p1559_p0 }
  0x54   : > { %1569 = shalt.err (!%p1566_p10)
}
  0x55   : > { %1389 = dma.hbm_to_vmem [thread:$0]  (!%p1836_p11), %s2167_s2, 16, %s220_s12, [#allocation7]  }
  0x56   : > { %s1741_s8 = smov [#allocation11]   ;;  %s1570_s15 = scalar_lea.hbm %s2169_s4, 2048 }
  0x57   : > { %s242_s11 = sshll.u32 %s1741_s8, 4  ;;  %p1571_p9 = scmp.ne.s32.totalorder %s2169_s4, %s1570_s15  ;;  %s243_s11 = int_to_ptr.vmem [resolvable:$true] %s242_s11 }
  0x58   : > { %p1577_p1 = scmp.lt.u32.totalorder %s1570_s15, %s2169_s4 }
  0x59   : > { %p1573_p12 = pnand %p1571_p9, %p1852_p13 }
  0x5b   : > { %p1574_p2 = pneg %p1573_p12 }
  0x5d   : > { %p1579_p4 = pnand %p1577_p1, %p1574_p2 }
  0x5f   : > { %1582 = shalt.err (!%p1579_p4)
}
  0x60   : > { %s1583_s12 = scalar_lea.vmem %s243_s11, 2048  ;;  %p1591_p3 = scmp.lt.s32.totalorder %s243_s11, %s243_s11 }
  0x61   : > { %p1584_p6 = scmp.ne.s32.totalorder %s243_s11, %s1583_s12  ;;  %p1592_p5 = scmp.lt.s32.totalorder %s1583_s12, %s1583_s12 }
  0x63   : > { %p1586_p8 = pnand %p1584_p6, %p1852_p13  ;;  %p1593_p7 = por %p1592_p5, %p1591_p3 }
  0x65   : > { %p1587_p0 = pneg %p1586_p8 }
  0x67   : > { %p1594_p10 = pnand %p1593_p7, %p1587_p0 }
  0x69   : > { %1597 = shalt.err (!%p1594_p10)
}
  0x6a   : > { %s1742_s7 = smov 128   ;;  %s1743_s18 = smov 8  }
  0x6b   : > { %1395 = dma.hbm_to_vmem [thread:$0]  (!%p1836_p11), %s2169_s4, 2048, %s243_s11, [#allocation10], %s1742_s7, %s1742_s7, %s1743_s18  }
  0x6c   : > { %s1932_s30 = sadd.s32 1, %s1734_s24   ;;  %s35_s13 = sadd.s32 1, %s1730_s23 }
  0x6d   : > { %s32_s8 = ssub.s32 %s1734_s24, %s1932_s30  ;;  %p42_p9 = scmp.ne.s32.totalorder %s1730_s23, %s1726_s22 }
  0x6e   : > { %p33_p13 = scmp.eq.s32.totalorder %s32_s8, 0  ;;  %p43_p12 = scmp.eq.s32.totalorder %s1734_s24, 0 }
  0x6f   : > { %p2180_p1 = scmp.eq.s32.totalorder %s1808_s25, 1  ;;  %p1411_p6 = scmp.lt.s32.totalorder %s1734_s24, 2 }
  0x70   : > { %s1941_s14 = scalar_select %p33_p13, %s1730_s23, %s35_s13  }
  0x71   : > { %p44_p2 = por %p43_p12, %p42_p9  ;;  %p1945_p4 = por %p2180_p1, %p42_p9 }
  0x72   : > { %s256_s15 = sand.u32 1, %s1730_s23   ;;  %s1149_s11 = sshll.u32 %s1734_s24, 9 }
  0x73   : > { %s1096_s16 = sshll.u32 %s256_s15, 5  ;;  %s1955_s20 = scalar_lea.hbm %s2165_s0, %s1149_s11 }
  0x74   : > { %s260_s12 = scalar_lea.vmem [#allocation3], %s1096_s16  ;;  %p1959_p11 = pnand %p1411_p6, %p44_p2 }
  0x75   : > { %s268_s9 = sshll.u32 %s260_s12, 4  ;;  %s1963_s8 = scalar_lea.sflag [#allocation4], %s256_s15  ;;  %s1957_s9 = int_to_ptr.vmem [resolvable:$true] %s268_s9 }
  0x76   : > { %s1598_s13 = scalar_lea.hbm %s1955_s20, 512  ;;  %p1600_p0 = pneg %p1959_p11 }
  0x77   : > { %p1599_p8 = scmp.ne.s32.totalorder %s1955_s20, %s1598_s13  ;;  %s1603_s17 = scalar_lea.hbm %s2165_s0, 1024 }
  0x78   : > { %p1604_p7 = scmp.lt.u32.totalorder %s1955_s20, %s2165_s0  ;;  %p1605_p10 = scmp.lt.u32.totalorder %s1603_s17, %s1598_s13 }
  0x79   : > { %p1601_p3 = pnand %p1600_p0, %p1599_p8  ;;  %p1607_p9 = scmp.lt.u32.totalorder %s1598_s13, %s1955_s20 }
  0x7a   : > { %p1606_p13 = por %p1605_p10, %p1604_p7 }
  0x7b   : > { %p1602_p5 = pneg %p1601_p3 }
  0x7c   : > { %p1608_p12 = por %p1607_p9, %p1606_p13 }
  0x7e   : > { %p1609_p2 = pnand %p1608_p12, %p1602_p5 }
  0x80   : > { %1612 = shalt.err (!%p1609_p2)
}
  0x81   : > { %s1613_s15 = scalar_lea.vmem %s1957_s9, 512  ;;  %s1744_s16 = smov [#allocation3]  }
  0x82   : > { %p1614_p1 = scmp.ne.s32.totalorder %s1957_s9, %s1613_s15  ;;  %s1618_s11 = sshll.u32 %s1744_s16, 4  ;;  %s1619_s11 = int_to_ptr.vmem [resolvable:$false] %s1618_s11 }
  0x83   : > { %s1620_s19 = scalar_lea.vmem %s1619_s11, 1024  ;;  %p1621_p3 = scmp.lt.s32.totalorder %s1957_s9, %s1619_s11 }
  0x84   : > { %p1616_p6 = pnand %p1614_p1, %p1600_p0  ;;  %p1622_p7 = scmp.lt.s32.totalorder %s1620_s19, %s1613_s15 }
  0x86   : > { %p1617_p8 = pneg %p1616_p6  ;;  %p1623_p10 = por %p1622_p7, %p1621_p3 }
  0x88   : > { %p1624_p13 = pnand %p1623_p10, %p1617_p8 }
  0x8a   : > { %1627 = shalt.err (!%p1624_p13)
}
  0x8b   : > { %1399 = dma.hbm_to_vmem [thread:$0]  (!%p1959_p11), %s1955_s20, 512, %s1957_s9, %s1963_s8, %s1742_s7, %s1742_s7, %s1743_s18  }
  0x8c   : > { %p2183_p0 = scmp.ne.s32.totalorder %s2177_s29, 0 }
  0x8d   : > { %s1997_s13 = sand.u32 (!%p2183_p0), 1, %s1726_s22   ;;  %p2184_p5 = scmp.ne.s32.totalorder (!%p2183_p0), %s2175_s27, 0 }
  0x8e   : > { %280 = sbr.rel (%p2183_p0) target bundleno = 698 (0x2ba), region = 40  ;;  %s1101_s17 = sshll.u32 (!%p2183_p0), %s1997_s13, 5 }
  0x8f   : > { %s283_s12 = scalar_lea.sflag (!%p2183_p0), [#allocation4], %s1997_s13  ;;  %s2003_s26 = scalar_lea.vmem (!%p2183_p0), [#allocation3], %s1101_s17 }
  0x95   : > { %1701 = dma.done.wait (%p2184_p5), %s283_s12, 512  }
  0x96   : > { %1703 = vsyncadd (%p2184_p5), %s283_s12, 4294966784  ;;  %p2185_p11 = scmp.eq.s32.totalorder %s1808_s25, 0 }
  0x98   : > { %1705 = dma.done.wait (%p2185_p11), [#allocation7], 32   ;;  %p2186_p9 = pmov %p2185_p11 }
  0x9a   : > { %1707 = vsyncadd (%p2186_p9), [#allocation7], 4294967264  ;;  %p2187_p12 = pmov %p2186_p9 }
  0x9b   : > { %p2188_p2 = pmov %p2186_p9 }
  0x9c   : > { %1709 = dma.done.wait (%p2187_p12), [#allocation10], 5120  }
  0x9d   : > { %1711 = vsyncadd (%p2188_p2), [#allocation10], 4294962176  ;;  %v1745_v0 = vmov 0.0   ;;  %vm1746_vm0 = vmmov 0   ;;  %v1462_v1 = vld [vmem:[#allocation9] sm:$0xff]   ;;  %v1463_v2 = vld [vmem:[#allocation9 + $0x8] sm:$0xff]  }
  0x9e   : > { %1230 = vmatprep.subr.bf16.mxu0 %v1745_v0  ;;  %339 = vst [vmem:[#allocation2] sm:$0x1] %v1745_v0  ;;  %340 = vst [vmem:[#allocation2 + $0x11] sm:$0x7f] %v1745_v0  ;;  %1202 = vmatprep.subr.bf16.mxu1 %v1745_v0  ;;  %v1464_v3 = vld [vmem:[#allocation9 + $0x10] sm:$0xff]   ;;  %v1465_v4 = vld [vmem:[#allocation9 + $0x18] sm:$0xff]  }
  0x9f   : > { %365 = vst [vmem:[#allocation2 + $0x18] sm:$0x1] %v1745_v0  ;;  %366 = vst [vmem:[#allocation2 + $0x29] sm:$0x7f] %v1745_v0  ;;  %1246 = vmatprep.mubr.msk.bf16.mxu0 %vm1746_vm0, %v1745_v0  ;;  %1218 = vmatprep.mubr.msk.bf16.mxu1 %vm1746_vm0, %v1745_v0  ;;  %v1470_v5 = vld [vmem:[#allocation9 + $0x40] sm:$0xff]   ;;  %v1472_v14 = vld [vmem:[#allocation9 + $0x48] sm:$0xff]  }
  0xa0   : > { %1231 = vmatpush3.bf16.msra.mxu0 %v1462_v1  ;;  %v341_v6 = vld [vmem:[%s2003_s26] sm:$0xff]  ;;  %v342_v7 = vld [vmem:[%s2003_s26 + $0x8] sm:$0xff]  ;;  %1203 = vmatpush3.bf16.msra.mxu1 %v1470_v5  ;;  %v1474_v18 = vld [vmem:[#allocation9 + $0x50] sm:$0xff]   ;;  %s2077_s27 = scalar_lea.vmem [#allocation12], %s1101_s17  ;;  %vm823_vm1 = vcmask 1040384   ;;  %s1151_s7 = sshll.u32 %s1808_s25, 9 }
  0xa1   : > { %1232 = vmatprep.subr.bf16.mxu0 %v1745_v0  ;;  %v1108_v8 = vld [vmem:[#allocation6] ss:$0 sm:$0xff]  ;;  %v1109_v11 = vld [vmem:[#allocation8] ss:$0 sm:$0xff]  ;;  %1204 = vmatprep.subr.bf16.mxu1 %v1745_v0  ;;  %v1466_v15 = vld [vmem:[#allocation9 + $0x20] sm:$0xff]   ;;  %s933_s29 = sshll.u32 %s2077_s27, 4  ;;  %s2090_s9 = scalar_lea.hbm %s2170_s5, %s1151_s7  ;;  %s2084_s29 = int_to_ptr.vmem [resolvable:$true] %s933_s29 }
  0xa2   : > { %v350_v9 = vmul.f32 %v1108_v8, %v341_v6  ;;  %v351_v10 = vmul.f32 %v1108_v8, %v342_v7  ;;  %v1467_v19 = vld [vmem:[#allocation9 + $0x28] sm:$0xff]   ;;  %v1476_v20 = vld [vmem:[#allocation9 + $0x58] sm:$0xff]   ;;  %v1468_v23 = vld [vmem:[#allocation9 + $0x30] sm:$0xff]   ;;  %v1747_v6 = vmov 0.0|0.0   ;;  %s914_s8 = scalar_lea.sflag [#allocation5], %s1997_s13  ;;  %s1628_s15 = scalar_lea.vmem %s2084_s29, 512 }
  0xa3   : > { %v1110_v21 = vld [vmem:[%s2003_s26 + $0x10] sm:$0xff]  ;;  %v1478_v25 = vld [vmem:[#allocation9 + $0x60] sm:$0xff]   ;;  %v1111_v26 = vld [vmem:[%s2003_s26 + $0x18] sm:$0xff]  ;;  %p1629_p1 = scmp.ne.s32.totalorder %s2084_s29, %s1628_s15  ;;  %s1748_s16 = smov [#allocation12]  }
  0xa4   : > { %1233 = vmatpush3.bf16.msra.mxu0 %v1463_v2  ;;  %v2033_v12 = vadd.f32 %v1109_v11, %v350_v9  ;;  %v2035_v13 = vadd.f32 %v1109_v11, %v351_v10  ;;  %1205 = vmatpush3.bf16.msra.mxu1 %v1472_v14  ;;  %v377_v22 = vmul.f32 %v1110_v21, %v1108_v8  ;;  %v1469_v29 = vld [vmem:[#allocation9 + $0x38] sm:$0xff]   ;;  %v1480_v30 = vld [vmem:[#allocation9 + $0x68] sm:$0xff]   ;;  %v1471_v36 = vld [vmem:[#allocation9 + $0x80] sm:$0xff]   ;;  %s1632_s11 = sshll.u32 %s1748_s16, 4  ;;  %s1633_s11 = int_to_ptr.vmem [resolvable:$false] %s1632_s11 }
  0xa5   : > { %1234 = vmatprep.subr.bf16.mxu0 %v1745_v0  ;;  %1206 = vmatprep.subr.bf16.mxu1 %v1745_v0  ;;  %v378_v28 = vmul.f32 %v1111_v26, %v1108_v8  ;;  %v1482_v37 = vld [vmem:[#allocation9 + $0x70] sm:$0xff]   ;;  %v1473_v38 = vld [vmem:[#allocation9 + $0x88] sm:$0xff]   ;;  %v1484_v41 = vld [vmem:[#allocation9 + $0x78] sm:$0xff]   ;;  %p1630_p6 = pnand %p1629_p1, %p1945_p4  ;;  %s1634_s19 = scalar_lea.vmem %s1633_s11, 1024 }
  0xa6   : > { %v361_v16 = vmax.f32 %v2033_v12, 0.0  ;;  %v362_v17 = vmax.f32 %v2035_v13, 0.0  ;;  %v386_v24 = vadd.f32 %v1109_v11, %v377_v22  ;;  %v1475_v43 = vld [vmem:[#allocation9 + $0x90] sm:$0xff]   ;;  %v1477_v45 = vld [vmem:[#allocation9 + $0x98] sm:$0xff]   ;;  %v1479_v50 = vld [vmem:[#allocation9 + $0xa0] sm:$0xff]   ;;  %p1635_p3 = scmp.lt.s32.totalorder %s2084_s29, %s1633_s11  ;;  %p1636_p7 = scmp.lt.s32.totalorder %s1634_s19, %s1628_s15 }
  0xa7   : > { %v387_v32 = vadd.f32 %v1109_v11, %v378_v28  ;;  %v419_v48 = vld [vmem:[#allocation2 + $0x11] sm:$0xff]  ;;  %v1481_v52 = vld [vmem:[#allocation9 + $0xa8] sm:$0xff]   ;;  %v422_v53 = vld [vmem:[#allocation2 + $0x29] sm:$0x3f]  ;;  %p1631_p8 = pneg %p1630_p6 }
  0xa8   : > { %1235 = vmatpush3.bf16.msra.mxu0 %v1464_v3  ;;  %363 = vst [vmem:[#allocation2 + $0x1] sm:$0xff] %v361_v16  ;;  %364 = vst [vmem:[#allocation2 + $0x9] sm:$0xff] %v362_v17  ;;  %1207 = vmatpush3.bf16.msra.mxu1 %v1474_v18  ;;  %v388_v27 = vmax.f32 %v386_v24, 0.0  ;;  %v423_v44 = vpack.c.bf16 %v362_v17, %v361_v16  ;;  %v1483_v54 = vld [vmem:[#allocation9 + $0xb0] sm:$0xff]   ;;  %v1485_v56 = vld [vmem:[#allocation9 + $0xb8] sm:$0xff]   ;;  %p1637_p10 = por %p1636_p7, %p1635_p3 }
  0xa9   : > { %1236 = vmatprep.subr.bf16.mxu0 %v1745_v0  ;;  %1208 = vmatprep.subr.bf16.mxu1 %v1745_v0  ;;  %v389_v34 = vmax.f32 %v387_v32, 0.0  ;;  %v654_v1 = vld [vmem:[#allocation2 + $0x2a] sm:$0x3f]  ;;  %v825_v3 = vld [vmem:[#allocation11] sm:$0xff]  ;;  %v830_v11 = vld [vmem:[#allocation11 + $0x28] sm:$0xff] }
  0xaa   : > { %390 = vst [vmem:[#allocation2 + $0x19] sm:$0xff] %v388_v27  ;;  %v424_v51 = vpack.c.bf16 %v388_v27, %v419_v48  ;;  %v827_v7 = vld [vmem:[#allocation11 + $0x10] sm:$0xff]  ;;  %v828_v8 = vld [vmem:[#allocation11 + $0x18] sm:$0xff]  ;;  %v829_v10 = vld [vmem:[#allocation11 + $0x20] sm:$0xff]  ;;  %p1638_p13 = pnand %p1637_p10, %p1631_p8 }
  0xab   : > { %391 = vst [vmem:[#allocation2 + $0x21] sm:$0xff] %v389_v34  ;;  %v425_v55 = vpack.c.bf16 %v422_v53, %v389_v34  ;;  %v1325_v9 = vpack.c.bf16 %v828_v8, %v827_v7  ;;  %v1328_v12 = vpack.c.bf16 %v830_v11, %v829_v10  ;;  %v832_v13 = vld [vmem:[#allocation11 + $0x38] sm:$0xff]  ;;  %v834_v16 = vld [vmem:[#allocation11 + $0x48] sm:$0xff]  ;;  %v835_v18 = vld [vmem:[#allocation11 + $0x50] sm:$0xff] }
  0xac   : > { %1237 = vmatpush3.bf16.msra.mxu0 %v1465_v4  ;;  %1209 = vmatpush3.bf16.msra.mxu1 %v1476_v20  ;;  %v826_v4 = vld [vmem:[#allocation11 + $0x8] sm:$0xff]  ;;  %v837_v21 = vld [vmem:[#allocation11 + $0x60] sm:$0xff]  ;;  %v839_v24 = vld [vmem:[#allocation11 + $0x70] sm:$0xff] }
  0xad   : > { %1238 = vmatprep.subr.bf16.mxu0 %v1745_v0  ;;  %1210 = vmatprep.subr.bf16.mxu1 %v1745_v0  ;;  %v1322_v5 = vpack.c.bf16 %v826_v4, %v825_v3  ;;  %v838_v22 = vld [vmem:[#allocation11 + $0x68] sm:$0xff] }
  0xaf   : > { %v392_v31 = vld [vmem:[#allocation2] sm:$0xff]  ;;  %v393_v33 = vld [vmem:[#allocation2 + $0x8] sm:$0xff]  ;;  %v394_v39 = vld [vmem:[#allocation2 + $0x10] sm:$0xff] }
  0xb0   : > { %1239 = vmatpush3.bf16.msra.mxu0 %v1466_v15  ;;  %1211 = vmatpush3.bf16.msra.mxu1 %v1478_v25  ;;  %v398_v35 = vpack.c.bf16 %v393_v33, %v392_v31  ;;  %v649_v57 = vld [vmem:[#allocation2 + $0x2] sm:$0xff]  ;;  %v650_v58 = vld [vmem:[#allocation2 + $0xa] sm:$0xff]  ;;  %v833_v15 = vld [vmem:[#allocation11 + $0x40] sm:$0xff] }
  0xb1   : > { %1240 = vmatprep.subr.bf16.mxu0 %v1745_v0  ;;  %1212 = vmatprep.subr.bf16.mxu1 %v1745_v0  ;;  %v395_v40 = vld [vmem:[#allocation2 + $0x18] sm:$0xff]  ;;  %v655_v59 = vpack.c.bf16 %v650_v58, %v649_v57  ;;  %v1334_v17 = vpack.c.bf16 %v834_v16, %v833_v15  ;;  %v840_v25 = vld [vmem:[#allocation11 + $0x78] sm:$0xff] }
  0xb2   : > { %v399_v42 = vpack.c.bf16 %v395_v40, %v394_v39  ;;  %v396_v46 = vld [vmem:[#allocation2 + $0x20] sm:$0xff]  ;;  %v397_v47 = vld [vmem:[#allocation2 + $0x28] sm:$0x3f]  ;;  %v651_v60 = vld [vmem:[#allocation2 + $0x12] sm:$0xff]  ;;  %v1343_v26 = vpack.c.bf16 %v840_v25, %v839_v24 }
  0xb3   : > { %v400_v49 = vpack.c.bf16 %v397_v47, %v396_v46  ;;  %v652_v61 = vld [vmem:[#allocation2 + $0x1a] sm:$0xff]  ;;  %v653_v63 = vld [vmem:[#allocation2 + $0x22] sm:$0xff] }
  0xb4   : > { %1241 = vmatpush3.bf16.msra.mxu0 %v1467_v19  ;;  %1213 = vmatpush3.bf16.msra.mxu1 %v1480_v30  ;;  %v656_v62 = vpack.c.bf16 %v652_v61, %v651_v60  ;;  %v657_v2 = vpack.c.bf16 %v654_v1, %v653_v63  ;;  %v836_v19 = vld [vmem:[#allocation11 + $0x58] sm:$0xff] }
  0xb5   : > { %1242 = vmatprep.subr.bf16.mxu0 %v1745_v0  ;;  %1214 = vmatprep.subr.bf16.mxu1 %v1745_v0  ;;  %v1337_v20 = vpack.c.bf16 %v836_v19, %v835_v18 }
  0xb8   : > { %1243 = vmatpush3.bf16.msra.mxu0 %v1468_v23  ;;  %1215 = vmatpush3.bf16.msra.mxu1 %v1482_v37  ;;  %v1340_v23 = vpack.c.bf16 %v838_v22, %v837_v21 }
  0xb9   : > { %1244 = vmatprep.subr.bf16.mxu0 %v1745_v0  ;;  %1216 = vmatprep.subr.bf16.mxu1 %v1745_v0 }
  0xbc   : > { %1245 = vmatpush3.bf16.msra.mxu0 %v1469_v29  ;;  %1217 = vmatpush3.bf16.msra.mxu1 %v1484_v41 }
  0xbd   : > { %1258 = vmatprep.subr.bf16.mxu0 %v1745_v0  ;;  %1321 = vmatprep.subr.bf16.mxu1 %v1747_v6 }
  0xbf   : > { %1247 = vmatmul.mubr.bf16.vlgmr.msra.gmra.mrb[0].mxu0 %v398_v35  ;;  %1219 = vmatmul.mubr.bf16.vlgmr.msra.gmra.mrb[0].mxu1 %v423_v44 }
  0xc0   : > { %1259 = vmatpush3.bf16.msra.mxu0 %v1471_v36  ;;  %1250 = vmatprep.mubr.msk.bf16.mxu0 %vm1746_vm0, %v1745_v0 }
  0xc1   : > { %1260 = vmatprep.subr.bf16.mxu0 %v1745_v0  ;;  %1222 = vmatprep.mubr.msk.bf16.mxu1 %vm1746_vm0, %v1745_v0 }
  0xc2   : > { %1323 = vmatpush3.bf16.msra.mxu1 %v1322_v5 }
  0xc3   : > { %1324 = vmatprep.subr.bf16.mxu1 %v1747_v6 }
  0xc4   : > { %1261 = vmatpush3.bf16.msra.mxu0 %v1473_v38 }
  0xc5   : > { %1262 = vmatprep.subr.bf16.mxu0 %v1745_v0 }
  0xc6   : > { %1326 = vmatpush3.bf16.msra.mxu1 %v1325_v9 }
  0xc7   : > { %1251 = vmatmul.mubr.bf16.gmra.mrb[4].mxu0 %v399_v42  ;;  %1223 = vmatmul.mubr.bf16.gmra.mrb[4].mxu1 %v424_v51 }
  0xc8   : > { %1263 = vmatpush3.bf16.msra.mxu0 %v1475_v43  ;;  %1254 = vmatprep.mubr.msk.bf16.mxu0 %vm1746_vm0, %v1745_v0 }
  0xc9   : > { %1264 = vmatprep.subr.bf16.mxu0 %v1745_v0  ;;  %1226 = vmatprep.mubr.msk.bf16.mxu1 %vm1746_vm0, %v1745_v0 }
  0xca   : > { %1327 = vmatprep.subr.bf16.mxu1 %v1747_v6 }
  0xcb   : > { %1329 = vmatpush3.bf16.msra.mxu1 %v1328_v12 }
  0xcc   : > { %1265 = vmatpush3.bf16.msra.mxu0 %v1477_v45  ;;  %1330 = vmatprep.subr.bf16.mxu1 %v1747_v6 }
  0xcd   : > { %1266 = vmatprep.subr.bf16.mxu0 %v1745_v0 }
  0xcf   : > { %1255 = vmatmul.mubr.bf16.gmra.mrb[8].mxu0 %v400_v49  ;;  %1227 = vmatmul.mubr.bf16.gmra.mrb[8].mxu1 %v425_v55 }
  0xd0   : > { %1267 = vmatpush3.bf16.msra.mxu0 %v1479_v50  ;;  %1274 = vmatprep.mubr.msk.bf16.mxu0 %vm1746_vm0, %v1745_v0 }
  0xd1   : > { %1268 = vmatprep.subr.bf16.mxu0 %v1745_v0  ;;  %1318 = vmatprep.mubr.msk.f32.mxu1 %vm1746_vm0, %v1745_v0 }
  0xd4   : > { %1269 = vmatpush3.bf16.msra.mxu0 %v1481_v52 }
  0xd5   : > { %1270 = vmatprep.subr.bf16.mxu0 %v1745_v0 }
  0xd8   : > { %1271 = vmatpush3.bf16.msra.mxu0 %v1483_v54 }
  0xd9   : > { %1272 = vmatprep.subr.bf16.mxu0 %v1745_v0 }
  0xdc   : > { %1273 = vmatpush3.bf16.msra.mxu0 %v1485_v56 }
  0xdf   : > { %1275 = vmatmul.mubr.bf16.vlgmr.msra.gmra.mrb[0].mxu0 %v655_v59 }
  0xe0   : > { %1278 = vmatprep.mubr.msk.bf16.mxu0 %vm1746_vm0, %v1745_v0 }
  0xe7   : > { %1279 = vmatmul.mubr.bf16.gmra.mrb[4].mxu0 %v656_v62 }
  0xe8   : > { %1282 = vmatprep.mubr.msk.bf16.mxu0 %vm1746_vm0, %v1745_v0  ;;  %v831_v0 = vld [vmem:[#allocation11 + $0x30] sm:$0xff] }
  0xe9   : > { %v1331_v14 = vpack.c.bf16 %v832_v13, %v831_v0 }
  0xeb   : > { %1332 = vmatpush3.bf16.msra.mxu1 %v1331_v14 }
  0xec   : > { %1333 = vmatprep.subr.bf16.mxu1 %v1747_v6 }
  0xef   : > { %1283 = vmatmul.mubr.bf16.gmra.mrb[8].mxu0 %v657_v2  ;;  %1335 = vmatpush3.bf16.msra.mxu1 %v1334_v17 }
  0xf0   : > { %1336 = vmatprep.subr.bf16.mxu1 %v1747_v6 }
  0xf3   : > { %1338 = vmatpush3.bf16.msra.mxu1 %v1337_v20 }
  0xf4   : > { %1339 = vmatprep.subr.bf16.mxu1 %v1747_v6 }
  0xf7   : > { %1341 = vmatpush3.bf16.msra.mxu1 %v1340_v23 }
  0xf8   : > { %1342 = vmatprep.subr.bf16.mxu1 %v1747_v6 }
  0xfb   : > { %1344 = vmatpush3.bf16.msra.mxu1 %v1343_v26 }
 0x192   : > { %v525_v27 = vpop.f32.mrb[0].mxu1 }
 0x193   : > { %v1220_v28 = vpop.f32.mrb[1].mxu1 }
 0x194   : > { %v528_v29 = vpop.f32.mrb[2].mxu1 }
 0x195   : > { %v1221_v30 = vpop.f32.mrb[3].mxu1 }
 0x19a   : > { %v533_v31 = vpop.f32.mrb[4].mxu1 }
 0x19b   : > { %v1224_v32 = vpop.f32.mrb[5].mxu1 }
 0x19c   : > { %v535_v33 = vpop.f32.mrb[6].mxu1 }
 0x19d   : > { %v1225_v34 = vpop.f32.mrb[7].mxu1 }
 0x1a2   : > { %v540_v35 = vpop.f32.mrb[8].mxu1 }
 0x1a3   : > { %v1228_v36 = vpop.f32.mrb[9].mxu1 }
 0x1a4   : > { %v543_v37 = vpop.f32.mrb[10].mxu1 }
 0x1a5   : > { %v1229_v38 = vpop.f32.mrb[11].mxu1 }
 0x1b2   : > { %v757_v39 = vpop.f32.mrb[0].mxu0 }
 0x1b3   : > { %v1345_v40 = vadd.f32 %v757_v39, %v525_v27  ;;  %v1276_v41 = vpop.f32.mrb[1].mxu0 }
 0x1b4   : > { %v760_v42 = vpop.f32.mrb[2].mxu0 }
 0x1b5   : > { %782 = vst [vmem:[%s2077_s27] sm:$0xff] %v1345_v40  ;;  %v1346_v43 = vadd.f32 %v760_v42, %v528_v29  ;;  %v1277_v44 = vpop.f32.mrb[3].mxu0  ;;  %v792_v45 = vmul.f32 %v1345_v40, %v1345_v40 }
 0x1b7   : > { %783 = vst [vmem:[%s2077_s27 + $0x8] sm:$0xff] %v1346_v43  ;;  %v784_v46 = vadd.f32 %v1346_v43, %v1345_v40  ;;  %v793_v47 = vmul.f32 %v1346_v43, %v1346_v43 }
 0x1b9   : > { %v794_v48 = vadd.f32 %v793_v47, %v792_v45  ;;  %v785_v52 = vrot.slane %v784_v46, 4 }
 0x1ba   : > { %v765_v49 = vpop.f32.mrb[4].mxu0 }
 0x1bb   : > { %v1280_v50 = vpop.f32.mrb[5].mxu0  ;;  %v795_v55 = vrot.slane %v794_v48, 4  ;;  %v786_v56 = vadd.f32 %v785_v52, %v784_v46 }
 0x1bc   : > { %v767_v51 = vpop.f32.mrb[6].mxu0 }
 0x1bd   : > { %v1347_v53 = vadd.f32 %v767_v51, %v535_v33  ;;  %v1281_v54 = vpop.f32.mrb[7].mxu0  ;;  %v796_v58 = vadd.f32 %v795_v55, %v794_v48  ;;  %v787_v62 = vrot.slane %v786_v56, 2 }
 0x1bf   : > { %1138 = vst [vmem:[%s2077_s27 + $0x10] sm:$0xff] %v1347_v53  ;;  %v813_v63 = vmul.f32 %v1347_v53, %v1347_v53  ;;  %v797_v4 = vrot.slane %v796_v58, 2  ;;  %v788_v7 = vadd.f32 %v787_v62, %v786_v56 }
 0x1c1   : > { %v798_v10 = vadd.f32 %v797_v4, %v796_v58  ;;  %v789_v0 = vrot.slane %v788_v7, 1 }
 0x1c2   : > { %v772_v57 = vpop.f32.mrb[8].mxu0 }
 0x1c3   : > { %v1348_v59 = vadd.f32 %v772_v57, %v540_v35  ;;  %v1284_v60 = vpop.f32.mrb[9].mxu0  ;;  %v799_v15 = vrot.slane %v798_v10, 1  ;;  %v790_v18 = vadd.f32 %v789_v0, %v788_v7 }
 0x1c4   : > { %v775_v61 = vpop.f32.mrb[10].mxu0 }
 0x1c5   : > { %1139 = vst [vmem:[%s2077_s27 + $0x18] sm:$0xff] %v1348_v59  ;;  %v805_v1 = vadd.f32 %v1348_v59, %v1347_v53  ;;  %v814_v2 = vmul.f32 %v1348_v59, %v1348_v59  ;;  %v1285_v3 = vpop.f32.mrb[11].mxu0  ;;  %v800_v21 = vadd.f32 %v799_v15, %v798_v10 }
 0x1c7   : > { %v806_v5 = vrot.slane %v805_v1, 4  ;;  %v815_v6 = vadd.f32 %v814_v2, %v813_v63 }
 0x1c9   : > { %v807_v8 = vadd.f32 %v806_v5, %v805_v1  ;;  %v816_v9 = vrot.slane %v815_v6, 4 }
 0x1cb   : > { %v808_v11 = vrot.slane %v807_v8, 2  ;;  %v817_v12 = vadd.f32 %v816_v9, %v815_v6 }
 0x1cd   : > { %v809_v13 = vadd.f32 %v808_v11, %v807_v8  ;;  %v818_v14 = vrot.slane %v817_v12, 2 }
 0x1cf   : > { %v810_v16 = vrot.slane %v809_v13, 1  ;;  %v819_v17 = vadd.f32 %v818_v14, %v817_v12 }
 0x1d1   : > { %v811_v19 = vadd.f32 %v810_v16, %v809_v13  ;;  %v820_v20 = vrot.slane %v819_v17, 1 }
 0x1d3   : > { %v812_v22 = vadd.f32 %v811_v19, %v790_v18  ;;  %v821_v23 = vadd.f32 %v820_v20, %v819_v17 }
 0x1d5   : > { %v822_v24 = vadd.f32 %v821_v23, %v800_v21 }
 0x1d7   : > { %v824_v25 = vsel %vm823_vm1, %v812_v22, %v822_v24 }
 0x1d8   : > { %1319 = vmatmul.mubr.f32.vlgmr.msra.gmra.mrb[12].mxu1 %v824_v25 }
 0x1d9   : > { %1641 = shalt.err (!%p1638_p13)
}
 0x1da   : > { %s1642_s17 = scalar_lea.hbm %s2090_s9, 512  ;;  %s1646_s27 = scalar_lea.hbm %s2170_s5, 1024 }
 0x1db   : > { %p1643_p0 = scmp.ne.s32.totalorder %s2090_s9, %s1642_s17  ;;  %p1647_p9 = scmp.lt.u32.totalorder %s2090_s9, %s2170_s5 }
 0x1dc   : > { %p1648_p12 = scmp.lt.u32.totalorder %s1646_s27, %s1642_s17  ;;  %p1650_p1 = scmp.lt.u32.totalorder %s1642_s17, %s2090_s9 }
 0x1dd   : > { %p1644_p5 = pnand %p1643_p0, %p1945_p4 }
 0x1de   : > { %p1649_p2 = por %p1648_p12, %p1647_p9 }
 0x1df   : > { %p1645_p11 = pneg %p1644_p5 }
 0x1e0   : > { %p1651_p6 = por %p1650_p1, %p1649_p2 }
 0x1e2   : > { %p1652_p8 = pnand %p1651_p6, %p1645_p11 }
 0x1e4   : > { %1655 = shalt.err (!%p1652_p8)
}
 0x1e5   : > { %s1749_s20 = smov 128   ;;  %s1750_s15 = smov 8   ;;  %vm911_vm2 = vcmask 58368  }
 0x1e6   : > { %1379 = dma.vmem_to_hbm [thread:$0]  (%p1945_p4), %s2084_s29, 512, %s2090_s9, %s914_s8, %s1749_s20, %s1749_s20, %s1750_s15  }
 0x1e7   : > { %s1107_s16 = sshll.u32 %s1997_s13, 1  ;;  %s1145_s11 = sshll.u32 %s1808_s25, 5 }
 0x1e8   : > { %s335_s19 = scalar_lea.vmem [#allocation13], %s1107_s16  ;;  %s2121_s27 = scalar_lea.hbm %s2171_s6, %s1145_s11 }
 0x1e9   : > { %s949_s17 = sshll.u32 %s335_s19, 4  ;;  %s919_s7 = scalar_lea.sflag [#allocation14], %s1997_s13  ;;  %s2123_s17 = int_to_ptr.vmem [resolvable:$true] %s949_s17 }
 0x1ea   : > { %s1656_s29 = scalar_lea.vmem %s2123_s17, 32  ;;  %s1751_s25 = smov [#allocation13]  }
 0x1eb   : > { %p1657_p3 = scmp.ne.s32.totalorder %s2123_s17, %s1656_s29  ;;  %s1660_s9 = sshll.u32 %s1751_s25, 4  ;;  %s1661_s9 = int_to_ptr.vmem [resolvable:$false] %s1660_s9 }
 0x1ec   : > { %s1662_s8 = scalar_lea.vmem %s1661_s9, 64  ;;  %p1663_p13 = scmp.lt.s32.totalorder %s2123_s17, %s1661_s9 }
 0x1ed   : > { %p1658_p7 = pnand %p1657_p3, %p1945_p4  ;;  %p1664_p0 = scmp.lt.s32.totalorder %s1662_s8, %s1656_s29 }
 0x1ef   : > { %p1659_p10 = pneg %p1658_p7  ;;  %p1665_p5 = por %p1664_p0, %p1663_p13 }
 0x1f1   : > { %p1666_p11 = pnand %p1665_p5, %p1659_p10 }
 0x2ab   : > { %v907_v26 = vpop.f32.mrb[12].mxu1 }
 0x2ac   : > { %912 = vst.msk [vmem:[%s335_s19] sm:$0x3] %vm911_vm2, %v907_v26  ;;  %v1320_v27 = vpop.f32.mrb[13].mxu1 }
 0x2ad   : > { %1669 = shalt.err (!%p1666_p11)
}
 0x2ae   : > { %s1670_s13 = scalar_lea.hbm %s2121_s27, 32  ;;  %s1674_s15 = scalar_lea.hbm %s2171_s6, 64 }
 0x2af   : > { %p1671_p9 = scmp.ne.s32.totalorder %s2121_s27, %s1670_s13  ;;  %p1675_p1 = scmp.lt.u32.totalorder %s2121_s27, %s2171_s6 }
 0x2b0   : > { %p1676_p6 = scmp.lt.u32.totalorder %s1674_s15, %s1670_s13  ;;  %p1678_p3 = scmp.lt.u32.totalorder %s1670_s13, %s2121_s27 }
 0x2b1   : > { %p1672_p12 = pnand %p1671_p9, %p1945_p4 }
 0x2b2   : > { %p1677_p8 = por %p1676_p6, %p1675_p1 }
 0x2b3   : > { %p1673_p2 = pneg %p1672_p12 }
 0x2b4   : > { %p1679_p7 = por %p1678_p3, %p1677_p8 }
 0x2b6   : > { %p1680_p10 = pnand %p1679_p7, %p1673_p2 }
 0x2b8   : > { %1683 = shalt.err (!%p1680_p10)
}
 0x2b9   : > { %1380 = dma.vmem_to_hbm [thread:$0]  (%p1945_p4), %s2123_s17, 32, %s2121_s27, %s919_s7  }
 0x2ba PF: > { %s961_s19 = sand.u32 1, %s1722_s21   ;;  %p2189_p13 = scmp.ne.s32.totalorder %s2176_s28, 0 }
 0x2bb   : > { %p2190_p0 = scmp.ge.s32.totalorder %s1734_s24, 2  ;;  %s962_s12 = scalar_lea.sflag [#allocation5], %s961_s19 }
 0x2bd   : > { %p1401_p5 = pnand %p2190_p0, %p2189_p13 }
 0x2bf   : > { %1713 = dma.done.wait (!%p1401_p5), %s962_s12, 512  }
 0x2c0   : > { %1715 = vsyncadd (!%p1401_p5), %s962_s12, 4294966784  ;;  %s971_s26 = scalar_lea.sflag [#allocation14], %s961_s19 }
 0x2c1   : > { %1717 = dma.done.wait (!%p1401_p5), %s971_s26, 32  }
 0x2c2   : > { %1719 = vsyncadd (!%p1401_p5), %s971_s26, 4294967264  ;;  %p25_p4 = scmp.ge.s32.totalorder %s1932_s30, 4   ;;  %s2191_s21 = smov %s1726_s22 }
 0x2c3   : > { %s2192_s22 = smov %s1730_s23  ;;  %s2193_s23 = smov %s1941_s14 }
 0x2c4   : > { %s2194_s24 = smov %s1932_s30  ;;  %27 = sbr.rel (!%p25_p4) target bundleno = 9 (0x9), region = 122 }
 0x2cb   :  { %976 = vsyncpa [#allocation4], 1 }
 0x2cc   :  { %978 = vsyncpa [#allocation4 + $0x1], 1 }
 0x2cd   :  { %979 = vsyncpa [#allocation7], 1 }
 0x2ce   :  { %980 = vsyncpa [#allocation10], 1 }
 0x2cf   :  { %981 = vsyncpa [#allocation5], 1 }
 0x2d0   :  { %983 = vsyncpa [#allocation5 + $0x1], 1 }
 0x2d1   :  { %984 = vsyncpa [#allocation14], 1 }
 0x2d2   :  { %986 = vsyncpa [#allocation14 + $0x1], 1 }

</bundles_post_ra>
